<compile_context>
chip_gen: v5e
topology: v5e:2x2
jax: 0.10.0
libtpu: 0.0.40
codegen_flags: <defaults>
</compile_context>

<pallas_src>
import math
import functools

import jax
import jax.numpy as jnp
from jax.experimental import pallas as pl
from jax.experimental.pallas import tpu as pltpu


# ----------------------------- in-kernel helpers -----------------------------

def _layernorm(x, g, b, eps=1e-5):
    # x: (R, E) f32, g/b: (1, E) f32
    mu = jnp.mean(x, axis=-1, keepdims=True)
    var = jnp.mean((x - mu) ** 2, axis=-1, keepdims=True)
    return (x - mu) * jax.lax.rsqrt(var + eps) * g + b


def _mha(q2d, k2d, v2d, wo, bo, *, B, Tq, Tk, heads, dh, cdt):
    """Multi-head attention on batch-flattened 2-D activations.

    q2d: (B*Tq, heads*dh) f32 — already carries the 1/sqrt(dh) scale
         (folded into the packed Wq / bq in the wrapper).
    k2d, v2d: (B*Tk, heads*dh) f32.
    wo: (heads*dh, E) bf16, bo: (1, E) f32.

    QK^T and PV are each one 3-D batched dot_general over a fused
    (heads*B) batch dim.  The head concat is replaced by accumulating
    head_h @ Wo[h*dh:(h+1)*dh, :]  (== concat(heads) @ Wo).
    """
    def split(x2d, T):
        # (B*T, heads*dh) -> (heads*B, T, dh): head-major blocks along axis 0.
        parts = [x2d[:, h * dh:(h + 1) * dh].reshape(B, T, dh)
                 for h in range(heads)]
        return jnp.concatenate(parts, axis=0).astype(cdt)

    qh = split(q2d, Tq)                                     # (heads*B, Tq, dh)
    kh = split(k2d, Tk)                                     # (heads*B, Tk, dh)
    vh = split(v2d, Tk)                                     # (heads*B, Tk, dh)

    s = jnp.einsum('nqd,nkd->nqk', qh, kh,
                   preferred_element_type=jnp.float32)      # (heads*B, Tq, Tk)
    s = s - jnp.max(s, axis=-1, keepdims=True)
    p = jnp.exp(s)
    l = jnp.sum(p, axis=-1, keepdims=True)                  # (heads*B, Tq, 1)
    o = jnp.einsum('nqk,nkd->nqd', p.astype(cdt), vh,
                   preferred_element_type=jnp.float32)      # (heads*B, Tq, dh)
    o = o * pl.reciprocal(l, approx=True)                   # EUP, post-PV norm

    acc = jnp.zeros((B * Tq, wo.shape[1]), jnp.float32)
    for h in range(heads):
        oh = o[h * B:(h + 1) * B].reshape(B * Tq, dh)       # major-dim slice
        acc = acc + jnp.dot(oh.astype(cdt), wo[h * dh:(h + 1) * dh, :],
                            preferred_element_type=jnp.float32)
    return acc + bo


# ------------------------------- Pallas kernel --------------------------------

def _decoder_kernel(x_ref, y_ref,
                    aqkv_w_ref, aqkv_b_ref, ao_w_ref, ao_b_ref,
                    cq_w_ref, cq_b_ref, ckv_w_ref, ckv_b_ref,
                    co_w_ref, co_b_ref,
                    f1w_ref, f1b_ref, f2w_ref, f2b_ref,
                    lng_ref, lnb_ref,
                    o_ref, *, B, T_en, T_de, heads, num_layers):
    cdt = aqkv_w_ref.dtype                    # bf16 MXU operand dtype

    # ---- hoist every weight/bias/LN load above the layer loop (one vld each) --
    x = x_ref[...]                            # (B*T_en, E) f32
    y = y_ref[...]                            # (B*T_de, E) f32
    aqkv_w = aqkv_w_ref[...]; aqkv_b = aqkv_b_ref[...]
    ao_w = ao_w_ref[...];     ao_b = ao_b_ref[...]
    cq_w = cq_w_ref[...];     cq_b = cq_b_ref[...]
    ckv_w = ckv_w_ref[...];   ckv_b = ckv_b_ref[...]
    co_w = co_w_ref[...];     co_b = co_b_ref[...]
    f1w = f1w_ref[...];       f1b = f1b_ref[...]
    f2w = f2w_ref[...];       f2b = f2b_ref[...]
    lng = lng_ref[...];       lnb = lnb_ref[...]            # (3, E) f32

    E = ao_w.shape[0]
    dh = E // heads

    # Cross-attention K/V depend only on x_en + shared weights -> compute once.
    kv_c = jnp.dot(x.astype(cdt), ckv_w,
                   preferred_element_type=jnp.float32) + ckv_b   # (B*T_en, 2E)
    k_c, v_c = kv_c[:, :E], kv_c[:, E:]

    # dec_num_layers is small & static -> fully unrolled; activations never
    # leave VMEM/vregs between layers.
    for _ in range(num_layers):
        # y = norm1(self_attn(y) + y)   -- fused QKV projection (E -> 3E)
        qkv = jnp.dot(y.astype(cdt), aqkv_w,
                      preferred_element_type=jnp.float32) + aqkv_b
        sa = _mha(qkv[:, :E], qkv[:, E:2 * E], qkv[:, 2 * E:],
                  ao_w, ao_b, B=B, Tq=T_de, Tk=T_de, heads=heads, dh=dh, cdt=cdt)
        y1 = _layernorm(sa + y, lng[0:1], lnb[0:1])

        # cross = norm2(cross_attn(x_en, y1) + y1)
        q_c = jnp.dot(y1.astype(cdt), cq_w,
                      preferred_element_type=jnp.float32) + cq_b
        ca = _mha(q_c, k_c, v_c, co_w, co_b,
                  B=B, Tq=T_de, Tk=T_en, heads=heads, dh=dh, cdt=cdt)
        cross = _layernorm(ca + y1, lng[1:2], lnb[1:2])

        # y = norm3(fc2(relu(fc1(cross))) + cross)
        hid = jnp.maximum(
            jnp.dot(cross.astype(cdt), f1w,
                    preferred_element_type=jnp.float32) + f1b, 0.0)
        ff = jnp.dot(hid.astype(cdt), f2w,
                     preferred_element_type=jnp.float32) + f2b
        y = _layernorm(ff + cross, lng[2:3], lnb[2:3])

    o_ref[...] = y


# --------------------------------- wrapper -------------------------------------

def _pack_params(p, heads):
    """Repack params into fused [in, out] bf16 layouts; fold 1/sqrt(dh) into Wq/bq."""
    E = p["attn_w"].shape[-1]
    dh = E // heads
    scale = 1.0 / math.sqrt(dh)
    wdt = jnp.bfloat16

    wq, wk, wv, wo = p["attn_w"]
    bq, bk, bv, bo = p["attn_b"]
    cwq, cwk, cwv, cwo = p["cross_w"]
    cbq, cbk, cbv, cbo = p["cross_b"]

    return {
        "a_qkv_w": jnp.concatenate([wq * scale, wk, wv], axis=1).astype(wdt),  # (E,3E)
        "a_qkv_b": jnp.concatenate([bq * scale, bk, bv])[None, :],             # (1,3E) f32
        "a_o_w": wo.astype(wdt),                                               # (E,E)
        "a_o_b": bo[None, :],                                                  # (1,E) f32
        "c_q_w": (cwq * scale).astype(wdt),                                    # (E,E)
        "c_q_b": (cbq * scale)[None, :],                                       # (1,E) f32
        "c_kv_w": jnp.concatenate([cwk, cwv], axis=1).astype(wdt),             # (E,2E)
        "c_kv_b": jnp.concatenate([cbk, cbv])[None, :],                        # (1,2E) f32
        "c_o_w": cwo.astype(wdt),                                              # (E,E)
        "c_o_b": cbo[None, :],                                                 # (1,E) f32
        "f1_w": p["fc1_w"].astype(wdt), "f1_b": p["fc1_b"],                    # (E,M),(1,M)
        "f2_w": p["fc2_w"].astype(wdt), "f2_b": p["fc2_b"],                    # (M,E),(1,E)
        "ln_g": p["ln_g"], "ln_b": p["ln_b"],                                  # (3,E) f32
    }


def decoder_forward(x_en, y_de, params, heads, dec_num_layers):
    """Matches torch Decoder.forward: one shared DecoderLayer applied
    dec_num_layers times, all inside a single single-step pallas_call with the
    batch flattened onto the sublane axis."""
    B, T_en, E = x_en.shape
    _, T_de, _ = y_de.shape
    pk = _pack_params(params, heads)

    x2d = x_en.reshape(B * T_en, E).astype(jnp.float32)
    y2d = y_de.reshape(B * T_de, E).astype(jnp.float32)

    def whole(arr):  # whole-array block, constant index_map => DMA'd once
        return pl.BlockSpec(arr.shape, lambda i, _n=arr.ndim: (0,) * _n)

    kernel = functools.partial(_decoder_kernel, B=B, T_en=T_en, T_de=T_de,
                               heads=heads, num_layers=dec_num_layers)

    args = (x2d, y2d,
            pk["a_qkv_w"], pk["a_qkv_b"], pk["a_o_w"], pk["a_o_b"],
            pk["c_q_w"], pk["c_q_b"], pk["c_kv_w"], pk["c_kv_b"],
            pk["c_o_w"], pk["c_o_b"],
            pk["f1_w"], pk["f1_b"], pk["f2_w"], pk["f2_b"],
            pk["ln_g"], pk["ln_b"])

    out2d = pl.pallas_call(
        kernel,
        out_shape=jax.ShapeDtypeStruct((B * T_de, E), jnp.float32),
        grid=(1,),                                   # single step: no per-step
        in_specs=[whole(a) for a in args],           # pipeline overhead on 1-TC chips
        out_specs=pl.BlockSpec((B * T_de, E), lambda i: (0, 0)),
        compiler_params=pltpu.CompilerParams(
            dimension_semantics=("arbitrary",)),
    )(*args)
    return out2d.reshape(B, T_de, E)


# --------------------------- deterministic params -----------------------------

def init_params(key, E, M):
    keys = jax.random.split(key, 8)

    def lin(k, fan_in, shape):
        bound = 1.0 / math.sqrt(fan_in)
        return jax.random.uniform(k, shape, jnp.float32, -bound, bound)

    return {
        "attn_w": lin(keys[0], E, (4, E, E)),   # Wq, Wk, Wv, Wo  ([in, out])
        "attn_b": lin(keys[1], E, (4, E)),
        "cross_w": lin(keys[2], E, (4, E, E)),
        "cross_b": lin(keys[3], E, (4, E)),
        "fc1_w": lin(keys[4], E, (E, M)),
        "fc1_b": lin(keys[5], E, (1, M)),
        "fc2_w": lin(keys[6], M, (M, E)),
        "fc2_b": lin(keys[7], M, (1, E)),
        "ln_g": jnp.ones((3, E), jnp.float32),
        "ln_b": jnp.zeros((3, E), jnp.float32),
    }


# ------------------------------ pure-JAX reference -----------------------------

def _ref_layer(x_en, y_de, p, heads):
    def mha(q_in, kv_in, w, b):
        E = q_in.shape[-1]
        dh = E // heads
        Q = q_in @ w[0] + b[0]
        K = kv_in @ w[1] + b[1]
        V = kv_in @ w[2] + b[2]
        outs = []
        for h in range(heads):
            qh, kh, vh = (Z[..., h * dh:(h + 1) * dh] for Z in (Q, K, V))
            s = jnp.einsum("bqd,bkd->bqk", qh, kh) / math.sqrt(dh)
            pr = jax.nn.softmax(s, axis=-1)
            outs.append(jnp.einsum("bqk,bkd->bqd", pr, vh))
        return jnp.concatenate(outs, axis=-1) @ w[3] + b[3]

    def ln(x, g, b, eps=1e-5):
        mu = jnp.mean(x, axis=-1, keepdims=True)
        var = jnp.mean((x - mu) ** 2, axis=-1, keepdims=True)
        return (x - mu) / jnp.sqrt(var + eps) * g + b

    y1 = ln(mha(y_de, y_de, p["attn_w"], p["attn_b"]) + y_de,
            p["ln_g"][0], p["ln_b"][0])
    cross = ln(mha(y1, x_en, p["cross_w"], p["cross_b"]) + y1,
               p["ln_g"][1], p["ln_b"][1])
    h = jax.nn.relu(cross @ p["fc1_w"] + p["fc1_b"][0])
    out = h @ p["fc2_w"] + p["fc2_b"][0]
    return ln(out + cross, p["ln_g"][2], p["ln_b"][2])


def _ref_decoder(x_en, y_de, p, heads, n_layers):
    out = y_de
    for _ in range(n_layers):
        out = _ref_layer(x_en, out, p, heads)
    return out


# ------------------------------------ main -------------------------------------

if __name__ == "__main__":
    # Decoder(dec_num_layers=2, embed_size=32, heads=2, T=16, out_T_dim=8, map_dim=64)
    dec_num_layers = 2
    embed_size = 32
    heads = 2
    T = 16           # encoder sequence length
    out_T_dim = 8    # decoder sequence length
    map_dim = 64
    B = 2

    key = jax.random.PRNGKey(0)
    kx, ky, kp = jax.random.split(key, 3)
    x_en = jax.random.normal(kx, (B, T, embed_size), jnp.float32)
    y_de = jax.random.normal(ky, (B, out_T_dim, embed_size), jnp.float32)
    params = init_params(kp, embed_size, map_dim)

    out = decoder_forward(x_en, y_de, params, heads, dec_num_layers)
    out = jax.block_until_ready(out)

    # Accurate f32 reference; kernel runs bf16 MXU operands + approx reciprocal,
    # so the tolerance is loosened accordingly.
    with jax.default_matmul_precision("highest"):
        ref = _ref_decoder(x_en, y_de, params, heads, dec_num_layers)
    ref = jax.block_until_ready(ref)

    assert out.shape == (B, out_T_dim, embed_size)
    assert jnp.allclose(out, ref, atol=5e-2, rtol=5e-2), "mismatch vs JAX reference"

    print("KERNEL_OK")
</pallas_src>

<mosaic_0001>
module attributes {stable_mosaic.version = 11 : i64} {
  func.func @_decoder_kernel(%arg0: i32, %arg1: memref<32x32xf32, #tpu.memory_space<vmem>>, %arg2: memref<16x32xf32, #tpu.memory_space<vmem>>, %arg3: memref<32x96xbf16, #tpu.memory_space<vmem>>, %arg4: memref<1x96xf32, #tpu.memory_space<vmem>>, %arg5: memref<32x32xbf16, #tpu.memory_space<vmem>>, %arg6: memref<1x32xf32, #tpu.memory_space<vmem>>, %arg7: memref<32x32xbf16, #tpu.memory_space<vmem>>, %arg8: memref<1x32xf32, #tpu.memory_space<vmem>>, %arg9: memref<32x64xbf16, #tpu.memory_space<vmem>>, %arg10: memref<1x64xf32, #tpu.memory_space<vmem>>, %arg11: memref<32x32xbf16, #tpu.memory_space<vmem>>, %arg12: memref<1x32xf32, #tpu.memory_space<vmem>>, %arg13: memref<32x64xbf16, #tpu.memory_space<vmem>>, %arg14: memref<1x64xf32, #tpu.memory_space<vmem>>, %arg15: memref<64x32xbf16, #tpu.memory_space<vmem>>, %arg16: memref<1x32xf32, #tpu.memory_space<vmem>>, %arg17: memref<3x32xf32, #tpu.memory_space<vmem>>, %arg18: memref<3x32xf32, #tpu.memory_space<vmem>>, %arg19: memref<16x32xf32, #tpu.memory_space<vmem>>) attributes {dimension_semantics = [#tpu.dimension_semantics<arbitrary>], iteration_bounds = array<i64: 1>, scalar_prefetch = 0 : i64, scratch_operands = 0 : i64, tpu.core_type = #tpu.core_type<tc>, window_params = [{pipeline_mode = #tpu.pipeline_mode<synchronous>, transform_indices = @transform_0, window_bounds = array<i64: 32, 32>}, {pipeline_mode = #tpu.pipeline_mode<synchronous>, transform_indices = @transform_1, window_bounds = array<i64: 16, 32>}, {pipeline_mode = #tpu.pipeline_mode<synchronous>, transform_indices = @transform_2, window_bounds = array<i64: 32, 96>}, {pipeline_mode = #tpu.pipeline_mode<synchronous>, transform_indices = @transform_3, window_bounds = array<i64: 1, 96>}, {pipeline_mode = #tpu.pipeline_mode<synchronous>, transform_indices = @transform_4, window_bounds = array<i64: 32, 32>}, {pipeline_mode = #tpu.pipeline_mode<synchronous>, transform_indices = @transform_5, window_bounds = array<i64: 1, 32>}, {pipeline_mode = #tpu.pipeline_mode<synchronous>, transform_indices = @transform_6, window_bounds = array<i64: 32, 32>}, {pipeline_mode = #tpu.pipeline_mode<synchronous>, transform_indices = @transform_7, window_bounds = array<i64: 1, 32>}, {pipeline_mode = #tpu.pipeline_mode<synchronous>, transform_indices = @transform_8, window_bounds = array<i64: 32, 64>}, {pipeline_mode = #tpu.pipeline_mode<synchronous>, transform_indices = @transform_9, window_bounds = array<i64: 1, 64>}, {pipeline_mode = #tpu.pipeline_mode<synchronous>, transform_indices = @transform_10, window_bounds = array<i64: 32, 32>}, {pipeline_mode = #tpu.pipeline_mode<synchronous>, transform_indices = @transform_11, window_bounds = array<i64: 1, 32>}, {pipeline_mode = #tpu.pipeline_mode<synchronous>, transform_indices = @transform_12, window_bounds = array<i64: 32, 64>}, {pipeline_mode = #tpu.pipeline_mode<synchronous>, transform_indices = @transform_13, window_bounds = array<i64: 1, 64>}, {pipeline_mode = #tpu.pipeline_mode<synchronous>, transform_indices = @transform_14, window_bounds = array<i64: 64, 32>}, {pipeline_mode = #tpu.pipeline_mode<synchronous>, transform_indices = @transform_15, window_bounds = array<i64: 1, 32>}, {pipeline_mode = #tpu.pipeline_mode<synchronous>, transform_indices = @transform_16, window_bounds = array<i64: 3, 32>}, {pipeline_mode = #tpu.pipeline_mode<synchronous>, transform_indices = @transform_17, window_bounds = array<i64: 3, 32>}, {pipeline_mode = #tpu.pipeline_mode<synchronous>, transform_indices = @transform_18, window_bounds = array<i64: 16, 32>}]} {
    %c0 = arith.constant 0 : index
    %c0_0 = arith.constant 0 : index
    %0 = vector.load %arg1[%c0, %c0_0] : memref<32x32xf32, #tpu.memory_space<vmem>>, vector<32x32xf32>
    %c0_1 = arith.constant 0 : index
    %c0_2 = arith.constant 0 : index
    %1 = vector.load %arg2[%c0_1, %c0_2] : memref<16x32xf32, #tpu.memory_space<vmem>>, vector<16x32xf32>
    %c0_3 = arith.constant 0 : index
    %c0_4 = arith.constant 0 : index
    %2 = vector.load %arg3[%c0_3, %c0_4] : memref<32x96xbf16, #tpu.memory_space<vmem>>, vector<32x96xbf16>
    %c0_5 = arith.constant 0 : index
    %c0_6 = arith.constant 0 : index
    %3 = vector.load %arg4[%c0_5, %c0_6] : memref<1x96xf32, #tpu.memory_space<vmem>>, vector<1x96xf32>
    %c0_7 = arith.constant 0 : index
    %c0_8 = arith.constant 0 : index
    %4 = vector.load %arg5[%c0_7, %c0_8] : memref<32x32xbf16, #tpu.memory_space<vmem>>, vector<32x32xbf16>
    %c0_9 = arith.constant 0 : index
    %c0_10 = arith.constant 0 : index
    %5 = vector.load %arg6[%c0_9, %c0_10] : memref<1x32xf32, #tpu.memory_space<vmem>>, vector<1x32xf32>
    %c0_11 = arith.constant 0 : index
    %c0_12 = arith.constant 0 : index
    %6 = vector.load %arg7[%c0_11, %c0_12] : memref<32x32xbf16, #tpu.memory_space<vmem>>, vector<32x32xbf16>
    %c0_13 = arith.constant 0 : index
    %c0_14 = arith.constant 0 : index
    %7 = vector.load %arg8[%c0_13, %c0_14] : memref<1x32xf32, #tpu.memory_space<vmem>>, vector<1x32xf32>
    %c0_15 = arith.constant 0 : index
    %c0_16 = arith.constant 0 : index
    %8 = vector.load %arg9[%c0_15, %c0_16] : memref<32x64xbf16, #tpu.memory_space<vmem>>, vector<32x64xbf16>
    %c0_17 = arith.constant 0 : index
    %c0_18 = arith.constant 0 : index
    %9 = vector.load %arg10[%c0_17, %c0_18] : memref<1x64xf32, #tpu.memory_space<vmem>>, vector<1x64xf32>
    %c0_19 = arith.constant 0 : index
    %c0_20 = arith.constant 0 : index
    %10 = vector.load %arg11[%c0_19, %c0_20] : memref<32x32xbf16, #tpu.memory_space<vmem>>, vector<32x32xbf16>
    %c0_21 = arith.constant 0 : index
    %c0_22 = arith.constant 0 : index
    %11 = vector.load %arg12[%c0_21, %c0_22] : memref<1x32xf32, #tpu.memory_space<vmem>>, vector<1x32xf32>
    %c0_23 = arith.constant 0 : index
    %c0_24 = arith.constant 0 : index
    %12 = vector.load %arg13[%c0_23, %c0_24] : memref<32x64xbf16, #tpu.memory_space<vmem>>, vector<32x64xbf16>
    %c0_25 = arith.constant 0 : index
    %c0_26 = arith.constant 0 : index
    %13 = vector.load %arg14[%c0_25, %c0_26] : memref<1x64xf32, #tpu.memory_space<vmem>>, vector<1x64xf32>
    %c0_27 = arith.constant 0 : index
    %c0_28 = arith.constant 0 : index
    %14 = vector.load %arg15[%c0_27, %c0_28] : memref<64x32xbf16, #tpu.memory_space<vmem>>, vector<64x32xbf16>
    %c0_29 = arith.constant 0 : index
    %c0_30 = arith.constant 0 : index
    %15 = vector.load %arg16[%c0_29, %c0_30] : memref<1x32xf32, #tpu.memory_space<vmem>>, vector<1x32xf32>
    %c0_31 = arith.constant 0 : index
    %c0_32 = arith.constant 0 : index
    %16 = vector.load %arg17[%c0_31, %c0_32] : memref<3x32xf32, #tpu.memory_space<vmem>>, vector<3x32xf32>
    %c0_33 = arith.constant 0 : index
    %c0_34 = arith.constant 0 : index
    %17 = vector.load %arg18[%c0_33, %c0_34] : memref<3x32xf32, #tpu.memory_space<vmem>>, vector<3x32xf32>
    %18 = arith.truncf %0 : vector<32x32xf32> to vector<32x32xbf16>
    %cst = arith.constant dense<0.000000e+00> : vector<32x64xf32>
    %19 = tpu.matmul %18, %8, %cst {dimension_numbers = #tpu.dot_dimension_numbers<[1], [0], [0], [1], [0, 0, 1, 1], [], []>} : vector<32x32xbf16>, vector<32x64xbf16>, vector<32x64xf32> -> vector<32x64xf32>
    %20 = vector.broadcast %9 : vector<1x64xf32> to vector<32x64xf32>
    %21 = arith.addf %19, %20 : vector<32x64xf32>
    %22 = vector.extract_strided_slice %21 {offsets = [0, 0], sizes = [32, 32], strides = [1, 1]} : vector<32x64xf32> to vector<32x32xf32>
    %23 = vector.extract_strided_slice %21 {offsets = [0, 32], sizes = [32, 32], strides = [1, 1]} : vector<32x64xf32> to vector<32x32xf32>
    %24 = arith.truncf %1 : vector<16x32xf32> to vector<16x32xbf16>
    %cst_35 = arith.constant dense<0.000000e+00> : vector<16x96xf32>
    %25 = tpu.matmul %24, %2, %cst_35 {dimension_numbers = #tpu.dot_dimension_numbers<[1], [0], [0], [1], [0, 0, 1, 1], [], []>} : vector<16x32xbf16>, vector<32x96xbf16>, vector<16x96xf32> -> vector<16x96xf32>
    %26 = vector.broadcast %3 : vector<1x96xf32> to vector<16x96xf32>
    %27 = arith.addf %25, %26 : vector<16x96xf32>
    %28 = vector.extract_strided_slice %27 {offsets = [0, 0], sizes = [16, 32], strides = [1, 1]} : vector<16x96xf32> to vector<16x32xf32>
    %29 = vector.extract_strided_slice %27 {offsets = [0, 32], sizes = [16, 32], strides = [1, 1]} : vector<16x96xf32> to vector<16x32xf32>
    %30 = vector.extract_strided_slice %27 {offsets = [0, 64], sizes = [16, 32], strides = [1, 1]} : vector<16x96xf32> to vector<16x32xf32>
    %31 = vector.extract_strided_slice %28 {offsets = [0, 0], sizes = [16, 16], strides = [1, 1]} : vector<16x32xf32> to vector<16x16xf32>
    %32 = vector.shape_cast %31 : vector<16x16xf32> to vector<2x8x16xf32>
    %33 = vector.extract_strided_slice %28 {offsets = [0, 16], sizes = [16, 16], strides = [1, 1]} : vector<16x32xf32> to vector<16x16xf32>
    %34 = vector.shape_cast %33 : vector<16x16xf32> to vector<2x8x16xf32>
    %35 = tpu.concatenate %32, %34 in 0 : vector<2x8x16xf32>, vector<2x8x16xf32> -> vector<4x8x16xf32>
    %36 = arith.truncf %35 : vector<4x8x16xf32> to vector<4x8x16xbf16>
    %37 = vector.extract_strided_slice %29 {offsets = [0, 0], sizes = [16, 16], strides = [1, 1]} : vector<16x32xf32> to vector<16x16xf32>
    %38 = vector.shape_cast %37 : vector<16x16xf32> to vector<2x8x16xf32>
    %39 = vector.extract_strided_slice %29 {offsets = [0, 16], sizes = [16, 16], strides = [1, 1]} : vector<16x32xf32> to vector<16x16xf32>
    %40 = vector.shape_cast %39 : vector<16x16xf32> to vector<2x8x16xf32>
    %41 = tpu.concatenate %38, %40 in 0 : vector<2x8x16xf32>, vector<2x8x16xf32> -> vector<4x8x16xf32>
    %42 = arith.truncf %41 : vector<4x8x16xf32> to vector<4x8x16xbf16>
    %43 = vector.extract_strided_slice %30 {offsets = [0, 0], sizes = [16, 16], strides = [1, 1]} : vector<16x32xf32> to vector<16x16xf32>
    %44 = vector.shape_cast %43 : vector<16x16xf32> to vector<2x8x16xf32>
    %45 = vector.extract_strided_slice %30 {offsets = [0, 16], sizes = [16, 16], strides = [1, 1]} : vector<16x32xf32> to vector<16x16xf32>
    %46 = vector.shape_cast %45 : vector<16x16xf32> to vector<2x8x16xf32>
    %47 = tpu.concatenate %44, %46 in 0 : vector<2x8x16xf32>, vector<2x8x16xf32> -> vector<4x8x16xf32>
    %48 = arith.truncf %47 : vector<4x8x16xf32> to vector<4x8x16xbf16>
    "tpu.trace_start"() <{level = 10 : i32, message = "nqd,nkd->nqk"}> : () -> ()
    %cst_36 = arith.constant dense<0.000000e+00> : vector<4x8x8xf32>
    %49 = tpu.matmul %36, %42, %cst_36 {dimension_numbers = #tpu.dot_dimension_numbers<[2], [2], [1], [1], [0, 0, 0, 1, 1, 1], [0], [0]>} : vector<4x8x16xbf16>, vector<4x8x16xbf16>, vector<4x8x8xf32> -> vector<4x8x8xf32>
    "tpu.trace_stop"() : () -> ()
    %cst_37 = arith.constant dense<0xFF800000> : vector<4x8xf32>
    %50 = vector.multi_reduction <maximumf>, %49, %cst_37 [2] : vector<4x8x8xf32> to vector<4x8xf32>
    %51 = vector.shape_cast %50 : vector<4x8xf32> to vector<4x8x1xf32>
    %52 = vector.broadcast %51 : vector<4x8x1xf32> to vector<4x8x8xf32>
    %53 = arith.subf %49, %52 : vector<4x8x8xf32>
    %54 = math.exp %53 : vector<4x8x8xf32>
    %cst_38 = arith.constant dense<0.000000e+00> : vector<4x8xf32>
    %55 = vector.multi_reduction <add>, %54, %cst_38 [2] : vector<4x8x8xf32> to vector<4x8xf32>
    %56 = vector.shape_cast %55 : vector<4x8xf32> to vector<4x8x1xf32>
    %57 = arith.truncf %54 : vector<4x8x8xf32> to vector<4x8x8xbf16>
    "tpu.trace_start"() <{level = 10 : i32, message = "nqk,nkd->nqd"}> : () -> ()
    %cst_39 = arith.constant dense<0.000000e+00> : vector<4x8x16xf32>
    %58 = tpu.matmul %57, %48, %cst_39 {dimension_numbers = #tpu.dot_dimension_numbers<[2], [1], [1], [2], [0, 0, 0, 1, 1, 2], [0], [0]>} : vector<4x8x8xbf16>, vector<4x8x16xbf16>, vector<4x8x16xf32> -> vector<4x8x16xf32>
    "tpu.trace_stop"() : () -> ()
    %59 = tpu.reciprocal %56 {approx = true} : vector<4x8x1xf32> -> vector<4x8x1xf32>
    %60 = vector.broadcast %59 : vector<4x8x1xf32> to vector<4x8x16xf32>
    %61 = arith.mulf %58, %60 : vector<4x8x16xf32>
    %cst_40 = arith.constant 0.000000e+00 : f32
    %62 = vector.broadcast %cst_40 : f32 to vector<16x32xf32>
    %63 = vector.extract_strided_slice %61 {offsets = [0, 0, 0], sizes = [2, 8, 16], strides = [1, 1, 1]} : vector<4x8x16xf32> to vector<2x8x16xf32>
    %64 = vector.shape_cast %63 : vector<2x8x16xf32> to vector<16x16xf32>
    %65 = arith.truncf %64 : vector<16x16xf32> to vector<16x16xbf16>
    %66 = vector.extract_strided_slice %4 {offsets = [0, 0], sizes = [16, 32], strides = [1, 1]} : vector<32x32xbf16> to vector<16x32xbf16>
    %cst_41 = arith.constant dense<0.000000e+00> : vector<16x32xf32>
    %67 = tpu.matmul %65, %66, %cst_41 {dimension_numbers = #tpu.dot_dimension_numbers<[1], [0], [0], [1], [0, 0, 1, 1], [], []>} : vector<16x16xbf16>, vector<16x32xbf16>, vector<16x32xf32> -> vector<16x32xf32>
    %68 = arith.addf %62, %67 : vector<16x32xf32>
    %69 = vector.extract_strided_slice %61 {offsets = [2, 0, 0], sizes = [2, 8, 16], strides = [1, 1, 1]} : vector<4x8x16xf32> to vector<2x8x16xf32>
    %70 = vector.shape_cast %69 : vector<2x8x16xf32> to vector<16x16xf32>
    %71 = arith.truncf %70 : vector<16x16xf32> to vector<16x16xbf16>
    %72 = vector.extract_strided_slice %4 {offsets = [16, 0], sizes = [16, 32], strides = [1, 1]} : vector<32x32xbf16> to vector<16x32xbf16>
    %cst_42 = arith.constant dense<0.000000e+00> : vector<16x32xf32>
    %73 = tpu.matmul %71, %72, %cst_42 {dimension_numbers = #tpu.dot_dimension_numbers<[1], [0], [0], [1], [0, 0, 1, 1], [], []>} : vector<16x16xbf16>, vector<16x32xbf16>, vector<16x32xf32> -> vector<16x32xf32>
    %74 = arith.addf %68, %73 : vector<16x32xf32>
    %75 = vector.broadcast %5 : vector<1x32xf32> to vector<16x32xf32>
    %76 = arith.addf %74, %75 : vector<16x32xf32>
    %77 = arith.addf %76, %1 : vector<16x32xf32>
    %78 = vector.extract_strided_slice %16 {offsets = [0, 0], sizes = [1, 32], strides = [1, 1]} : vector<3x32xf32> to vector<1x32xf32>
    %79 = vector.extract_strided_slice %17 {offsets = [0, 0], sizes = [1, 32], strides = [1, 1]} : vector<3x32xf32> to vector<1x32xf32>
    %cst_43 = arith.constant dense<0.000000e+00> : vector<16xf32>
    %80 = vector.multi_reduction <add>, %77, %cst_43 [1] : vector<16x32xf32> to vector<16xf32>
    %81 = vector.shape_cast %80 : vector<16xf32> to vector<16x1xf32>
    %cst_44 = arith.constant 3.200000e+01 : f32
    %82 = vector.broadcast %cst_44 : f32 to vector<16x1xf32>
    %83 = arith.divf %81, %82 : vector<16x1xf32>
    %84 = vector.broadcast %83 : vector<16x1xf32> to vector<16x32xf32>
    %85 = arith.subf %77, %84 : vector<16x32xf32>
    %86 = arith.mulf %85, %85 : vector<16x32xf32>
    %cst_45 = arith.constant dense<0.000000e+00> : vector<16xf32>
    %87 = vector.multi_reduction <add>, %86, %cst_45 [1] : vector<16x32xf32> to vector<16xf32>
    %88 = vector.shape_cast %87 : vector<16xf32> to vector<16x1xf32>
    %cst_46 = arith.constant 3.200000e+01 : f32
    %89 = vector.broadcast %cst_46 : f32 to vector<16x1xf32>
    %90 = arith.divf %88, %89 : vector<16x1xf32>
    %91 = vector.broadcast %83 : vector<16x1xf32> to vector<16x32xf32>
    %92 = arith.subf %77, %91 : vector<16x32xf32>
    %cst_47 = arith.constant 9.99999974E-6 : f32
    %93 = vector.broadcast %cst_47 : f32 to vector<16x1xf32>
    %94 = arith.addf %90, %93 : vector<16x1xf32>
    %95 = math.rsqrt %94 : vector<16x1xf32>
    %96 = vector.broadcast %95 : vector<16x1xf32> to vector<16x32xf32>
    %97 = arith.mulf %92, %96 : vector<16x32xf32>
    %98 = vector.broadcast %78 : vector<1x32xf32> to vector<16x32xf32>
    %99 = arith.mulf %97, %98 : vector<16x32xf32>
    %100 = vector.broadcast %79 : vector<1x32xf32> to vector<16x32xf32>
    %101 = arith.addf %99, %100 : vector<16x32xf32>
    %102 = arith.truncf %101 : vector<16x32xf32> to vector<16x32xbf16>
    %cst_48 = arith.constant dense<0.000000e+00> : vector<16x32xf32>
    %103 = tpu.matmul %102, %6, %cst_48 {dimension_numbers = #tpu.dot_dimension_numbers<[1], [0], [0], [1], [0, 0, 1, 1], [], []>} : vector<16x32xbf16>, vector<32x32xbf16>, vector<16x32xf32> -> vector<16x32xf32>
    %104 = vector.broadcast %7 : vector<1x32xf32> to vector<16x32xf32>
    %105 = arith.addf %103, %104 : vector<16x32xf32>
    %106 = vector.extract_strided_slice %105 {offsets = [0, 0], sizes = [16, 16], strides = [1, 1]} : vector<16x32xf32> to vector<16x16xf32>
    %107 = vector.shape_cast %106 : vector<16x16xf32> to vector<2x8x16xf32>
    %108 = vector.extract_strided_slice %105 {offsets = [0, 16], sizes = [16, 16], strides = [1, 1]} : vector<16x32xf32> to vector<16x16xf32>
    %109 = vector.shape_cast %108 : vector<16x16xf32> to vector<2x8x16xf32>
    %110 = tpu.concatenate %107, %109 in 0 : vector<2x8x16xf32>, vector<2x8x16xf32> -> vector<4x8x16xf32>
    %111 = arith.truncf %110 : vector<4x8x16xf32> to vector<4x8x16xbf16>
    %112 = vector.extract_strided_slice %22 {offsets = [0, 0], sizes = [32, 16], strides = [1, 1]} : vector<32x32xf32> to vector<32x16xf32>
    %113 = vector.shape_cast %112 : vector<32x16xf32> to vector<2x16x16xf32>
    %114 = vector.extract_strided_slice %22 {offsets = [0, 16], sizes = [32, 16], strides = [1, 1]} : vector<32x32xf32> to vector<32x16xf32>
    %115 = vector.shape_cast %114 : vector<32x16xf32> to vector<2x16x16xf32>
    %116 = tpu.concatenate %113, %115 in 0 : vector<2x16x16xf32>, vector<2x16x16xf32> -> vector<4x16x16xf32>
    %117 = arith.truncf %116 : vector<4x16x16xf32> to vector<4x16x16xbf16>
    %118 = vector.extract_strided_slice %23 {offsets = [0, 0], sizes = [32, 16], strides = [1, 1]} : vector<32x32xf32> to vector<32x16xf32>
    %119 = vector.shape_cast %118 : vector<32x16xf32> to vector<2x16x16xf32>
    %120 = vector.extract_strided_slice %23 {offsets = [0, 16], sizes = [32, 16], strides = [1, 1]} : vector<32x32xf32> to vector<32x16xf32>
    %121 = vector.shape_cast %120 : vector<32x16xf32> to vector<2x16x16xf32>
    %122 = tpu.concatenate %119, %121 in 0 : vector<2x16x16xf32>, vector<2x16x16xf32> -> vector<4x16x16xf32>
    %123 = arith.truncf %122 : vector<4x16x16xf32> to vector<4x16x16xbf16>
    "tpu.trace_start"() <{level = 10 : i32, message = "nqd,nkd->nqk"}> : () -> ()
    %cst_49 = arith.constant dense<0.000000e+00> : vector<4x8x16xf32>
    %124 = tpu.matmul %111, %117, %cst_49 {dimension_numbers = #tpu.dot_dimension_numbers<[2], [2], [1], [1], [0, 0, 0, 1, 1, 1], [0], [0]>} : vector<4x8x16xbf16>, vector<4x16x16xbf16>, vector<4x8x16xf32> -> vector<4x8x16xf32>
    "tpu.trace_stop"() : () -> ()
    %cst_50 = arith.constant dense<0xFF800000> : vector<4x8xf32>
    %125 = vector.multi_reduction <maximumf>, %124, %cst_50 [2] : vector<4x8x16xf32> to vector<4x8xf32>
    %126 = vector.shape_cast %125 : vector<4x8xf32> to vector<4x8x1xf32>
    %127 = vector.broadcast %126 : vector<4x8x1xf32> to vector<4x8x16xf32>
    %128 = arith.subf %124, %127 : vector<4x8x16xf32>
    %129 = math.exp %128 : vector<4x8x16xf32>
    %cst_51 = arith.constant dense<0.000000e+00> : vector<4x8xf32>
    %130 = vector.multi_reduction <add>, %129, %cst_51 [2] : vector<4x8x16xf32> to vector<4x8xf32>
    %131 = vector.shape_cast %130 : vector<4x8xf32> to vector<4x8x1xf32>
    %132 = arith.truncf %129 : vector<4x8x16xf32> to vector<4x8x16xbf16>
    "tpu.trace_start"() <{level = 10 : i32, message = "nqk,nkd->nqd"}> : () -> ()
    %cst_52 = arith.constant dense<0.000000e+00> : vector<4x8x16xf32>
    %133 = tpu.matmul %132, %123, %cst_52 {dimension_numbers = #tpu.dot_dimension_numbers<[2], [1], [1], [2], [0, 0, 0, 1, 1, 2], [0], [0]>} : vector<4x8x16xbf16>, vector<4x16x16xbf16>, vector<4x8x16xf32> -> vector<4x8x16xf32>
    "tpu.trace_stop"() : () -> ()
    %134 = tpu.reciprocal %131 {approx = true} : vector<4x8x1xf32> -> vector<4x8x1xf32>
    %135 = vector.broadcast %134 : vector<4x8x1xf32> to vector<4x8x16xf32>
    %136 = arith.mulf %133, %135 : vector<4x8x16xf32>
    %cst_53 = arith.constant 0.000000e+00 : f32
    %137 = vector.broadcast %cst_53 : f32 to vector<16x32xf32>
    %138 = vector.extract_strided_slice %136 {offsets = [0, 0, 0], sizes = [2, 8, 16], strides = [1, 1, 1]} : vector<4x8x16xf32> to vector<2x8x16xf32>
    %139 = vector.shape_cast %138 : vector<2x8x16xf32> to vector<16x16xf32>
    %140 = arith.truncf %139 : vector<16x16xf32> to vector<16x16xbf16>
    %141 = vector.extract_strided_slice %10 {offsets = [0, 0], sizes = [16, 32], strides = [1, 1]} : vector<32x32xbf16> to vector<16x32xbf16>
    %cst_54 = arith.constant dense<0.000000e+00> : vector<16x32xf32>
    %142 = tpu.matmul %140, %141, %cst_54 {dimension_numbers = #tpu.dot_dimension_numbers<[1], [0], [0], [1], [0, 0, 1, 1], [], []>} : vector<16x16xbf16>, vector<16x32xbf16>, vector<16x32xf32> -> vector<16x32xf32>
    %143 = arith.addf %137, %142 : vector<16x32xf32>
    %144 = vector.extract_strided_slice %136 {offsets = [2, 0, 0], sizes = [2, 8, 16], strides = [1, 1, 1]} : vector<4x8x16xf32> to vector<2x8x16xf32>
    %145 = vector.shape_cast %144 : vector<2x8x16xf32> to vector<16x16xf32>
    %146 = arith.truncf %145 : vector<16x16xf32> to vector<16x16xbf16>
    %147 = vector.extract_strided_slice %10 {offsets = [16, 0], sizes = [16, 32], strides = [1, 1]} : vector<32x32xbf16> to vector<16x32xbf16>
    %cst_55 = arith.constant dense<0.000000e+00> : vector<16x32xf32>
    %148 = tpu.matmul %146, %147, %cst_55 {dimension_numbers = #tpu.dot_dimension_numbers<[1], [0], [0], [1], [0, 0, 1, 1], [], []>} : vector<16x16xbf16>, vector<16x32xbf16>, vector<16x32xf32> -> vector<16x32xf32>
    %149 = arith.addf %143, %148 : vector<16x32xf32>
    %150 = vector.broadcast %11 : vector<1x32xf32> to vector<16x32xf32>
    %151 = arith.addf %149, %150 : vector<16x32xf32>
    %152 = arith.addf %151, %101 : vector<16x32xf32>
    %153 = vector.extract_strided_slice %16 {offsets = [1, 0], sizes = [1, 32], strides = [1, 1]} : vector<3x32xf32> to vector<1x32xf32>
    %154 = vector.extract_strided_slice %17 {offsets = [1, 0], sizes = [1, 32], strides = [1, 1]} : vector<3x32xf32> to vector<1x32xf32>
    %cst_56 = arith.constant dense<0.000000e+00> : vector<16xf32>
    %155 = vector.multi_reduction <add>, %152, %cst_56 [1] : vector<16x32xf32> to vector<16xf32>
    %156 = vector.shape_cast %155 : vector<16xf32> to vector<16x1xf32>
    %cst_57 = arith.constant 3.200000e+01 : f32
    %157 = vector.broadcast %cst_57 : f32 to vector<16x1xf32>
    %158 = arith.divf %156, %157 : vector<16x1xf32>
    %159 = vector.broadcast %158 : vector<16x1xf32> to vector<16x32xf32>
    %160 = arith.subf %152, %159 : vector<16x32xf32>
    %161 = arith.mulf %160, %160 : vector<16x32xf32>
    %cst_58 = arith.constant dense<0.000000e+00> : vector<16xf32>
    %162 = vector.multi_reduction <add>, %161, %cst_58 [1] : vector<16x32xf32> to vector<16xf32>
    %163 = vector.shape_cast %162 : vector<16xf32> to vector<16x1xf32>
    %cst_59 = arith.constant 3.200000e+01 : f32
    %164 = vector.broadcast %cst_59 : f32 to vector<16x1xf32>
    %165 = arith.divf %163, %164 : vector<16x1xf32>
    %166 = vector.broadcast %158 : vector<16x1xf32> to vector<16x32xf32>
    %167 = arith.subf %152, %166 : vector<16x32xf32>
    %cst_60 = arith.constant 9.99999974E-6 : f32
    %168 = vector.broadcast %cst_60 : f32 to vector<16x1xf32>
    %169 = arith.addf %165, %168 : vector<16x1xf32>
    %170 = math.rsqrt %169 : vector<16x1xf32>
    %171 = vector.broadcast %170 : vector<16x1xf32> to vector<16x32xf32>
    %172 = arith.mulf %167, %171 : vector<16x32xf32>
    %173 = vector.broadcast %153 : vector<1x32xf32> to vector<16x32xf32>
    %174 = arith.mulf %172, %173 : vector<16x32xf32>
    %175 = vector.broadcast %154 : vector<1x32xf32> to vector<16x32xf32>
    %176 = arith.addf %174, %175 : vector<16x32xf32>
    %177 = arith.truncf %176 : vector<16x32xf32> to vector<16x32xbf16>
    %cst_61 = arith.constant dense<0.000000e+00> : vector<16x64xf32>
    %178 = tpu.matmul %177, %12, %cst_61 {dimension_numbers = #tpu.dot_dimension_numbers<[1], [0], [0], [1], [0, 0, 1, 1], [], []>} : vector<16x32xbf16>, vector<32x64xbf16>, vector<16x64xf32> -> vector<16x64xf32>
    %179 = vector.broadcast %13 : vector<1x64xf32> to vector<16x64xf32>
    %180 = arith.addf %178, %179 : vector<16x64xf32>
    %cst_62 = arith.constant 0.000000e+00 : f32
    %181 = vector.broadcast %cst_62 : f32 to vector<16x64xf32>
    %182 = arith.maximumf %180, %181 : vector<16x64xf32>
    %183 = arith.truncf %182 : vector<16x64xf32> to vector<16x64xbf16>
    %cst_63 = arith.constant dense<0.000000e+00> : vector<16x32xf32>
    %184 = tpu.matmul %183, %14, %cst_63 {dimension_numbers = #tpu.dot_dimension_numbers<[1], [0], [0], [1], [0, 0, 1, 1], [], []>} : vector<16x64xbf16>, vector<64x32xbf16>, vector<16x32xf32> -> vector<16x32xf32>
    %185 = vector.broadcast %15 : vector<1x32xf32> to vector<16x32xf32>
    %186 = arith.addf %184, %185 : vector<16x32xf32>
    %187 = arith.addf %186, %176 : vector<16x32xf32>
    %188 = vector.extract_strided_slice %16 {offsets = [2, 0], sizes = [1, 32], strides = [1, 1]} : vector<3x32xf32> to vector<1x32xf32>
    %189 = vector.extract_strided_slice %17 {offsets = [2, 0], sizes = [1, 32], strides = [1, 1]} : vector<3x32xf32> to vector<1x32xf32>
    %cst_64 = arith.constant dense<0.000000e+00> : vector<16xf32>
    %190 = vector.multi_reduction <add>, %187, %cst_64 [1] : vector<16x32xf32> to vector<16xf32>
    %191 = vector.shape_cast %190 : vector<16xf32> to vector<16x1xf32>
    %cst_65 = arith.constant 3.200000e+01 : f32
    %192 = vector.broadcast %cst_65 : f32 to vector<16x1xf32>
    %193 = arith.divf %191, %192 : vector<16x1xf32>
    %194 = vector.broadcast %193 : vector<16x1xf32> to vector<16x32xf32>
    %195 = arith.subf %187, %194 : vector<16x32xf32>
    %196 = arith.mulf %195, %195 : vector<16x32xf32>
    %cst_66 = arith.constant dense<0.000000e+00> : vector<16xf32>
    %197 = vector.multi_reduction <add>, %196, %cst_66 [1] : vector<16x32xf32> to vector<16xf32>
    %198 = vector.shape_cast %197 : vector<16xf32> to vector<16x1xf32>
    %cst_67 = arith.constant 3.200000e+01 : f32
    %199 = vector.broadcast %cst_67 : f32 to vector<16x1xf32>
    %200 = arith.divf %198, %199 : vector<16x1xf32>
    %201 = vector.broadcast %193 : vector<16x1xf32> to vector<16x32xf32>
    %202 = arith.subf %187, %201 : vector<16x32xf32>
    %cst_68 = arith.constant 9.99999974E-6 : f32
    %203 = vector.broadcast %cst_68 : f32 to vector<16x1xf32>
    %204 = arith.addf %200, %203 : vector<16x1xf32>
    %205 = math.rsqrt %204 : vector<16x1xf32>
    %206 = vector.broadcast %205 : vector<16x1xf32> to vector<16x32xf32>
    %207 = arith.mulf %202, %206 : vector<16x32xf32>
    %208 = vector.broadcast %188 : vector<1x32xf32> to vector<16x32xf32>
    %209 = arith.mulf %207, %208 : vector<16x32xf32>
    %210 = vector.broadcast %189 : vector<1x32xf32> to vector<16x32xf32>
    %211 = arith.addf %209, %210 : vector<16x32xf32>
    %212 = arith.truncf %211 : vector<16x32xf32> to vector<16x32xbf16>
    %cst_69 = arith.constant dense<0.000000e+00> : vector<16x96xf32>
    %213 = tpu.matmul %212, %2, %cst_69 {dimension_numbers = #tpu.dot_dimension_numbers<[1], [0], [0], [1], [0, 0, 1, 1], [], []>} : vector<16x32xbf16>, vector<32x96xbf16>, vector<16x96xf32> -> vector<16x96xf32>
    %214 = vector.broadcast %3 : vector<1x96xf32> to vector<16x96xf32>
    %215 = arith.addf %213, %214 : vector<16x96xf32>
    %216 = vector.extract_strided_slice %215 {offsets = [0, 0], sizes = [16, 32], strides = [1, 1]} : vector<16x96xf32> to vector<16x32xf32>
    %217 = vector.extract_strided_slice %215 {offsets = [0, 32], sizes = [16, 32], strides = [1, 1]} : vector<16x96xf32> to vector<16x32xf32>
    %218 = vector.extract_strided_slice %215 {offsets = [0, 64], sizes = [16, 32], strides = [1, 1]} : vector<16x96xf32> to vector<16x32xf32>
    %219 = vector.extract_strided_slice %216 {offsets = [0, 0], sizes = [16, 16], strides = [1, 1]} : vector<16x32xf32> to vector<16x16xf32>
    %220 = vector.shape_cast %219 : vector<16x16xf32> to vector<2x8x16xf32>
    %221 = vector.extract_strided_slice %216 {offsets = [0, 16], sizes = [16, 16], strides = [1, 1]} : vector<16x32xf32> to vector<16x16xf32>
    %222 = vector.shape_cast %221 : vector<16x16xf32> to vector<2x8x16xf32>
    %223 = tpu.concatenate %220, %222 in 0 : vector<2x8x16xf32>, vector<2x8x16xf32> -> vector<4x8x16xf32>
    %224 = arith.truncf %223 : vector<4x8x16xf32> to vector<4x8x16xbf16>
    %225 = vector.extract_strided_slice %217 {offsets = [0, 0], sizes = [16, 16], strides = [1, 1]} : vector<16x32xf32> to vector<16x16xf32>
    %226 = vector.shape_cast %225 : vector<16x16xf32> to vector<2x8x16xf32>
    %227 = vector.extract_strided_slice %217 {offsets = [0, 16], sizes = [16, 16], strides = [1, 1]} : vector<16x32xf32> to vector<16x16xf32>
    %228 = vector.shape_cast %227 : vector<16x16xf32> to vector<2x8x16xf32>
    %229 = tpu.concatenate %226, %228 in 0 : vector<2x8x16xf32>, vector<2x8x16xf32> -> vector<4x8x16xf32>
    %230 = arith.truncf %229 : vector<4x8x16xf32> to vector<4x8x16xbf16>
    %231 = vector.extract_strided_slice %218 {offsets = [0, 0], sizes = [16, 16], strides = [1, 1]} : vector<16x32xf32> to vector<16x16xf32>
    %232 = vector.shape_cast %231 : vector<16x16xf32> to vector<2x8x16xf32>
    %233 = vector.extract_strided_slice %218 {offsets = [0, 16], sizes = [16, 16], strides = [1, 1]} : vector<16x32xf32> to vector<16x16xf32>
    %234 = vector.shape_cast %233 : vector<16x16xf32> to vector<2x8x16xf32>
    %235 = tpu.concatenate %232, %234 in 0 : vector<2x8x16xf32>, vector<2x8x16xf32> -> vector<4x8x16xf32>
    %236 = arith.truncf %235 : vector<4x8x16xf32> to vector<4x8x16xbf16>
    "tpu.trace_start"() <{level = 10 : i32, message = "nqd,nkd->nqk"}> : () -> ()
    %cst_70 = arith.constant dense<0.000000e+00> : vector<4x8x8xf32>
    %237 = tpu.matmul %224, %230, %cst_70 {dimension_numbers = #tpu.dot_dimension_numbers<[2], [2], [1], [1], [0, 0, 0, 1, 1, 1], [0], [0]>} : vector<4x8x16xbf16>, vector<4x8x16xbf16>, vector<4x8x8xf32> -> vector<4x8x8xf32>
    "tpu.trace_stop"() : () -> ()
    %cst_71 = arith.constant dense<0xFF800000> : vector<4x8xf32>
    %238 = vector.multi_reduction <maximumf>, %237, %cst_71 [2] : vector<4x8x8xf32> to vector<4x8xf32>
    %239 = vector.shape_cast %238 : vector<4x8xf32> to vector<4x8x1xf32>
    %240 = vector.broadcast %239 : vector<4x8x1xf32> to vector<4x8x8xf32>
    %241 = arith.subf %237, %240 : vector<4x8x8xf32>
    %242 = math.exp %241 : vector<4x8x8xf32>
    %cst_72 = arith.constant dense<0.000000e+00> : vector<4x8xf32>
    %243 = vector.multi_reduction <add>, %242, %cst_72 [2] : vector<4x8x8xf32> to vector<4x8xf32>
    %244 = vector.shape_cast %243 : vector<4x8xf32> to vector<4x8x1xf32>
    %245 = arith.truncf %242 : vector<4x8x8xf32> to vector<4x8x8xbf16>
    "tpu.trace_start"() <{level = 10 : i32, message = "nqk,nkd->nqd"}> : () -> ()
    %cst_73 = arith.constant dense<0.000000e+00> : vector<4x8x16xf32>
    %246 = tpu.matmul %245, %236, %cst_73 {dimension_numbers = #tpu.dot_dimension_numbers<[2], [1], [1], [2], [0, 0, 0, 1, 1, 2], [0], [0]>} : vector<4x8x8xbf16>, vector<4x8x16xbf16>, vector<4x8x16xf32> -> vector<4x8x16xf32>
    "tpu.trace_stop"() : () -> ()
    %247 = tpu.reciprocal %244 {approx = true} : vector<4x8x1xf32> -> vector<4x8x1xf32>
    %248 = vector.broadcast %247 : vector<4x8x1xf32> to vector<4x8x16xf32>
    %249 = arith.mulf %246, %248 : vector<4x8x16xf32>
    %cst_74 = arith.constant 0.000000e+00 : f32
    %250 = vector.broadcast %cst_74 : f32 to vector<16x32xf32>
    %251 = vector.extract_strided_slice %249 {offsets = [0, 0, 0], sizes = [2, 8, 16], strides = [1, 1, 1]} : vector<4x8x16xf32> to vector<2x8x16xf32>
    %252 = vector.shape_cast %251 : vector<2x8x16xf32> to vector<16x16xf32>
    %253 = arith.truncf %252 : vector<16x16xf32> to vector<16x16xbf16>
    %254 = vector.extract_strided_slice %4 {offsets = [0, 0], sizes = [16, 32], strides = [1, 1]} : vector<32x32xbf16> to vector<16x32xbf16>
    %cst_75 = arith.constant dense<0.000000e+00> : vector<16x32xf32>
    %255 = tpu.matmul %253, %254, %cst_75 {dimension_numbers = #tpu.dot_dimension_numbers<[1], [0], [0], [1], [0, 0, 1, 1], [], []>} : vector<16x16xbf16>, vector<16x32xbf16>, vector<16x32xf32> -> vector<16x32xf32>
    %256 = arith.addf %250, %255 : vector<16x32xf32>
    %257 = vector.extract_strided_slice %249 {offsets = [2, 0, 0], sizes = [2, 8, 16], strides = [1, 1, 1]} : vector<4x8x16xf32> to vector<2x8x16xf32>
    %258 = vector.shape_cast %257 : vector<2x8x16xf32> to vector<16x16xf32>
    %259 = arith.truncf %258 : vector<16x16xf32> to vector<16x16xbf16>
    %260 = vector.extract_strided_slice %4 {offsets = [16, 0], sizes = [16, 32], strides = [1, 1]} : vector<32x32xbf16> to vector<16x32xbf16>
    %cst_76 = arith.constant dense<0.000000e+00> : vector<16x32xf32>
    %261 = tpu.matmul %259, %260, %cst_76 {dimension_numbers = #tpu.dot_dimension_numbers<[1], [0], [0], [1], [0, 0, 1, 1], [], []>} : vector<16x16xbf16>, vector<16x32xbf16>, vector<16x32xf32> -> vector<16x32xf32>
    %262 = arith.addf %256, %261 : vector<16x32xf32>
    %263 = vector.broadcast %5 : vector<1x32xf32> to vector<16x32xf32>
    %264 = arith.addf %262, %263 : vector<16x32xf32>
    %265 = arith.addf %264, %211 : vector<16x32xf32>
    %266 = vector.extract_strided_slice %16 {offsets = [0, 0], sizes = [1, 32], strides = [1, 1]} : vector<3x32xf32> to vector<1x32xf32>
    %267 = vector.extract_strided_slice %17 {offsets = [0, 0], sizes = [1, 32], strides = [1, 1]} : vector<3x32xf32> to vector<1x32xf32>
    %cst_77 = arith.constant dense<0.000000e+00> : vector<16xf32>
    %268 = vector.multi_reduction <add>, %265, %cst_77 [1] : vector<16x32xf32> to vector<16xf32>
    %269 = vector.shape_cast %268 : vector<16xf32> to vector<16x1xf32>
    %cst_78 = arith.constant 3.200000e+01 : f32
    %270 = vector.broadcast %cst_78 : f32 to vector<16x1xf32>
    %271 = arith.divf %269, %270 : vector<16x1xf32>
    %272 = vector.broadcast %271 : vector<16x1xf32> to vector<16x32xf32>
    %273 = arith.subf %265, %272 : vector<16x32xf32>
    %274 = arith.mulf %273, %273 : vector<16x32xf32>
    %cst_79 = arith.constant dense<0.000000e+00> : vector<16xf32>
    %275 = vector.multi_reduction <add>, %274, %cst_79 [1] : vector<16x32xf32> to vector<16xf32>
    %276 = vector.shape_cast %275 : vector<16xf32> to vector<16x1xf32>
    %cst_80 = arith.constant 3.200000e+01 : f32
    %277 = vector.broadcast %cst_80 : f32 to vector<16x1xf32>
    %278 = arith.divf %276, %277 : vector<16x1xf32>
    %279 = vector.broadcast %271 : vector<16x1xf32> to vector<16x32xf32>
    %280 = arith.subf %265, %279 : vector<16x32xf32>
    %cst_81 = arith.constant 9.99999974E-6 : f32
    %281 = vector.broadcast %cst_81 : f32 to vector<16x1xf32>
    %282 = arith.addf %278, %281 : vector<16x1xf32>
    %283 = math.rsqrt %282 : vector<16x1xf32>
    %284 = vector.broadcast %283 : vector<16x1xf32> to vector<16x32xf32>
    %285 = arith.mulf %280, %284 : vector<16x32xf32>
    %286 = vector.broadcast %266 : vector<1x32xf32> to vector<16x32xf32>
    %287 = arith.mulf %285, %286 : vector<16x32xf32>
    %288 = vector.broadcast %267 : vector<1x32xf32> to vector<16x32xf32>
    %289 = arith.addf %287, %288 : vector<16x32xf32>
    %290 = arith.truncf %289 : vector<16x32xf32> to vector<16x32xbf16>
    %cst_82 = arith.constant dense<0.000000e+00> : vector<16x32xf32>
    %291 = tpu.matmul %290, %6, %cst_82 {dimension_numbers = #tpu.dot_dimension_numbers<[1], [0], [0], [1], [0, 0, 1, 1], [], []>} : vector<16x32xbf16>, vector<32x32xbf16>, vector<16x32xf32> -> vector<16x32xf32>
    %292 = vector.broadcast %7 : vector<1x32xf32> to vector<16x32xf32>
    %293 = arith.addf %291, %292 : vector<16x32xf32>
    %294 = vector.extract_strided_slice %293 {offsets = [0, 0], sizes = [16, 16], strides = [1, 1]} : vector<16x32xf32> to vector<16x16xf32>
    %295 = vector.shape_cast %294 : vector<16x16xf32> to vector<2x8x16xf32>
    %296 = vector.extract_strided_slice %293 {offsets = [0, 16], sizes = [16, 16], strides = [1, 1]} : vector<16x32xf32> to vector<16x16xf32>
    %297 = vector.shape_cast %296 : vector<16x16xf32> to vector<2x8x16xf32>
    %298 = tpu.concatenate %295, %297 in 0 : vector<2x8x16xf32>, vector<2x8x16xf32> -> vector<4x8x16xf32>
    %299 = arith.truncf %298 : vector<4x8x16xf32> to vector<4x8x16xbf16>
    %300 = vector.extract_strided_slice %22 {offsets = [0, 0], sizes = [32, 16], strides = [1, 1]} : vector<32x32xf32> to vector<32x16xf32>
    %301 = vector.shape_cast %300 : vector<32x16xf32> to vector<2x16x16xf32>
    %302 = vector.extract_strided_slice %22 {offsets = [0, 16], sizes = [32, 16], strides = [1, 1]} : vector<32x32xf32> to vector<32x16xf32>
    %303 = vector.shape_cast %302 : vector<32x16xf32> to vector<2x16x16xf32>
    %304 = tpu.concatenate %301, %303 in 0 : vector<2x16x16xf32>, vector<2x16x16xf32> -> vector<4x16x16xf32>
    %305 = arith.truncf %304 : vector<4x16x16xf32> to vector<4x16x16xbf16>
    %306 = vector.extract_strided_slice %23 {offsets = [0, 0], sizes = [32, 16], strides = [1, 1]} : vector<32x32xf32> to vector<32x16xf32>
    %307 = vector.shape_cast %306 : vector<32x16xf32> to vector<2x16x16xf32>
    %308 = vector.extract_strided_slice %23 {offsets = [0, 16], sizes = [32, 16], strides = [1, 1]} : vector<32x32xf32> to vector<32x16xf32>
    %309 = vector.shape_cast %308 : vector<32x16xf32> to vector<2x16x16xf32>
    %310 = tpu.concatenate %307, %309 in 0 : vector<2x16x16xf32>, vector<2x16x16xf32> -> vector<4x16x16xf32>
    %311 = arith.truncf %310 : vector<4x16x16xf32> to vector<4x16x16xbf16>
    "tpu.trace_start"() <{level = 10 : i32, message = "nqd,nkd->nqk"}> : () -> ()
    %cst_83 = arith.constant dense<0.000000e+00> : vector<4x8x16xf32>
    %312 = tpu.matmul %299, %305, %cst_83 {dimension_numbers = #tpu.dot_dimension_numbers<[2], [2], [1], [1], [0, 0, 0, 1, 1, 1], [0], [0]>} : vector<4x8x16xbf16>, vector<4x16x16xbf16>, vector<4x8x16xf32> -> vector<4x8x16xf32>
    "tpu.trace_stop"() : () -> ()
    %cst_84 = arith.constant dense<0xFF800000> : vector<4x8xf32>
    %313 = vector.multi_reduction <maximumf>, %312, %cst_84 [2] : vector<4x8x16xf32> to vector<4x8xf32>
    %314 = vector.shape_cast %313 : vector<4x8xf32> to vector<4x8x1xf32>
    %315 = vector.broadcast %314 : vector<4x8x1xf32> to vector<4x8x16xf32>
    %316 = arith.subf %312, %315 : vector<4x8x16xf32>
    %317 = math.exp %316 : vector<4x8x16xf32>
    %cst_85 = arith.constant dense<0.000000e+00> : vector<4x8xf32>
    %318 = vector.multi_reduction <add>, %317, %cst_85 [2] : vector<4x8x16xf32> to vector<4x8xf32>
    %319 = vector.shape_cast %318 : vector<4x8xf32> to vector<4x8x1xf32>
    %320 = arith.truncf %317 : vector<4x8x16xf32> to vector<4x8x16xbf16>
    "tpu.trace_start"() <{level = 10 : i32, message = "nqk,nkd->nqd"}> : () -> ()
    %cst_86 = arith.constant dense<0.000000e+00> : vector<4x8x16xf32>
    %321 = tpu.matmul %320, %311, %cst_86 {dimension_numbers = #tpu.dot_dimension_numbers<[2], [1], [1], [2], [0, 0, 0, 1, 1, 2], [0], [0]>} : vector<4x8x16xbf16>, vector<4x16x16xbf16>, vector<4x8x16xf32> -> vector<4x8x16xf32>
    "tpu.trace_stop"() : () -> ()
    %322 = tpu.reciprocal %319 {approx = true} : vector<4x8x1xf32> -> vector<4x8x1xf32>
    %323 = vector.broadcast %322 : vector<4x8x1xf32> to vector<4x8x16xf32>
    %324 = arith.mulf %321, %323 : vector<4x8x16xf32>
    %cst_87 = arith.constant 0.000000e+00 : f32
    %325 = vector.broadcast %cst_87 : f32 to vector<16x32xf32>
    %326 = vector.extract_strided_slice %324 {offsets = [0, 0, 0], sizes = [2, 8, 16], strides = [1, 1, 1]} : vector<4x8x16xf32> to vector<2x8x16xf32>
    %327 = vector.shape_cast %326 : vector<2x8x16xf32> to vector<16x16xf32>
    %328 = arith.truncf %327 : vector<16x16xf32> to vector<16x16xbf16>
    %329 = vector.extract_strided_slice %10 {offsets = [0, 0], sizes = [16, 32], strides = [1, 1]} : vector<32x32xbf16> to vector<16x32xbf16>
    %cst_88 = arith.constant dense<0.000000e+00> : vector<16x32xf32>
    %330 = tpu.matmul %328, %329, %cst_88 {dimension_numbers = #tpu.dot_dimension_numbers<[1], [0], [0], [1], [0, 0, 1, 1], [], []>} : vector<16x16xbf16>, vector<16x32xbf16>, vector<16x32xf32> -> vector<16x32xf32>
    %331 = arith.addf %325, %330 : vector<16x32xf32>
    %332 = vector.extract_strided_slice %324 {offsets = [2, 0, 0], sizes = [2, 8, 16], strides = [1, 1, 1]} : vector<4x8x16xf32> to vector<2x8x16xf32>
    %333 = vector.shape_cast %332 : vector<2x8x16xf32> to vector<16x16xf32>
    %334 = arith.truncf %333 : vector<16x16xf32> to vector<16x16xbf16>
    %335 = vector.extract_strided_slice %10 {offsets = [16, 0], sizes = [16, 32], strides = [1, 1]} : vector<32x32xbf16> to vector<16x32xbf16>
    %cst_89 = arith.constant dense<0.000000e+00> : vector<16x32xf32>
    %336 = tpu.matmul %334, %335, %cst_89 {dimension_numbers = #tpu.dot_dimension_numbers<[1], [0], [0], [1], [0, 0, 1, 1], [], []>} : vector<16x16xbf16>, vector<16x32xbf16>, vector<16x32xf32> -> vector<16x32xf32>
    %337 = arith.addf %331, %336 : vector<16x32xf32>
    %338 = vector.broadcast %11 : vector<1x32xf32> to vector<16x32xf32>
    %339 = arith.addf %337, %338 : vector<16x32xf32>
    %340 = arith.addf %339, %289 : vector<16x32xf32>
    %341 = vector.extract_strided_slice %16 {offsets = [1, 0], sizes = [1, 32], strides = [1, 1]} : vector<3x32xf32> to vector<1x32xf32>
    %342 = vector.extract_strided_slice %17 {offsets = [1, 0], sizes = [1, 32], strides = [1, 1]} : vector<3x32xf32> to vector<1x32xf32>
    %cst_90 = arith.constant dense<0.000000e+00> : vector<16xf32>
    %343 = vector.multi_reduction <add>, %340, %cst_90 [1] : vector<16x32xf32> to vector<16xf32>
    %344 = vector.shape_cast %343 : vector<16xf32> to vector<16x1xf32>
    %cst_91 = arith.constant 3.200000e+01 : f32
    %345 = vector.broadcast %cst_91 : f32 to vector<16x1xf32>
    %346 = arith.divf %344, %345 : vector<16x1xf32>
    %347 = vector.broadcast %346 : vector<16x1xf32> to vector<16x32xf32>
    %348 = arith.subf %340, %347 : vector<16x32xf32>
    %349 = arith.mulf %348, %348 : vector<16x32xf32>
    %cst_92 = arith.constant dense<0.000000e+00> : vector<16xf32>
    %350 = vector.multi_reduction <add>, %349, %cst_92 [1] : vector<16x32xf32> to vector<16xf32>
    %351 = vector.shape_cast %350 : vector<16xf32> to vector<16x1xf32>
    %cst_93 = arith.constant 3.200000e+01 : f32
    %352 = vector.broadcast %cst_93 : f32 to vector<16x1xf32>
    %353 = arith.divf %351, %352 : vector<16x1xf32>
    %354 = vector.broadcast %346 : vector<16x1xf32> to vector<16x32xf32>
    %355 = arith.subf %340, %354 : vector<16x32xf32>
    %cst_94 = arith.constant 9.99999974E-6 : f32
    %356 = vector.broadcast %cst_94 : f32 to vector<16x1xf32>
    %357 = arith.addf %353, %356 : vector<16x1xf32>
    %358 = math.rsqrt %357 : vector<16x1xf32>
    %359 = vector.broadcast %358 : vector<16x1xf32> to vector<16x32xf32>
    %360 = arith.mulf %355, %359 : vector<16x32xf32>
    %361 = vector.broadcast %341 : vector<1x32xf32> to vector<16x32xf32>
    %362 = arith.mulf %360, %361 : vector<16x32xf32>
    %363 = vector.broadcast %342 : vector<1x32xf32> to vector<16x32xf32>
    %364 = arith.addf %362, %363 : vector<16x32xf32>
    %365 = arith.truncf %364 : vector<16x32xf32> to vector<16x32xbf16>
    %cst_95 = arith.constant dense<0.000000e+00> : vector<16x64xf32>
    %366 = tpu.matmul %365, %12, %cst_95 {dimension_numbers = #tpu.dot_dimension_numbers<[1], [0], [0], [1], [0, 0, 1, 1], [], []>} : vector<16x32xbf16>, vector<32x64xbf16>, vector<16x64xf32> -> vector<16x64xf32>
    %367 = vector.broadcast %13 : vector<1x64xf32> to vector<16x64xf32>
    %368 = arith.addf %366, %367 : vector<16x64xf32>
    %cst_96 = arith.constant 0.000000e+00 : f32
    %369 = vector.broadcast %cst_96 : f32 to vector<16x64xf32>
    %370 = arith.maximumf %368, %369 : vector<16x64xf32>
    %371 = arith.truncf %370 : vector<16x64xf32> to vector<16x64xbf16>
    %cst_97 = arith.constant dense<0.000000e+00> : vector<16x32xf32>
    %372 = tpu.matmul %371, %14, %cst_97 {dimension_numbers = #tpu.dot_dimension_numbers<[1], [0], [0], [1], [0, 0, 1, 1], [], []>} : vector<16x64xbf16>, vector<64x32xbf16>, vector<16x32xf32> -> vector<16x32xf32>
    %373 = vector.broadcast %15 : vector<1x32xf32> to vector<16x32xf32>
    %374 = arith.addf %372, %373 : vector<16x32xf32>
    %375 = arith.addf %374, %364 : vector<16x32xf32>
    %376 = vector.extract_strided_slice %16 {offsets = [2, 0], sizes = [1, 32], strides = [1, 1]} : vector<3x32xf32> to vector<1x32xf32>
    %377 = vector.extract_strided_slice %17 {offsets = [2, 0], sizes = [1, 32], strides = [1, 1]} : vector<3x32xf32> to vector<1x32xf32>
    %cst_98 = arith.constant dense<0.000000e+00> : vector<16xf32>
    %378 = vector.multi_reduction <add>, %375, %cst_98 [1] : vector<16x32xf32> to vector<16xf32>
    %379 = vector.shape_cast %378 : vector<16xf32> to vector<16x1xf32>
    %cst_99 = arith.constant 3.200000e+01 : f32
    %380 = vector.broadcast %cst_99 : f32 to vector<16x1xf32>
    %381 = arith.divf %379, %380 : vector<16x1xf32>
    %382 = vector.broadcast %381 : vector<16x1xf32> to vector<16x32xf32>
    %383 = arith.subf %375, %382 : vector<16x32xf32>
    %384 = arith.mulf %383, %383 : vector<16x32xf32>
    %cst_100 = arith.constant dense<0.000000e+00> : vector<16xf32>
    %385 = vector.multi_reduction <add>, %384, %cst_100 [1] : vector<16x32xf32> to vector<16xf32>
    %386 = vector.shape_cast %385 : vector<16xf32> to vector<16x1xf32>
    %cst_101 = arith.constant 3.200000e+01 : f32
    %387 = vector.broadcast %cst_101 : f32 to vector<16x1xf32>
    %388 = arith.divf %386, %387 : vector<16x1xf32>
    %389 = vector.broadcast %381 : vector<16x1xf32> to vector<16x32xf32>
    %390 = arith.subf %375, %389 : vector<16x32xf32>
    %cst_102 = arith.constant 9.99999974E-6 : f32
    %391 = vector.broadcast %cst_102 : f32 to vector<16x1xf32>
    %392 = arith.addf %388, %391 : vector<16x1xf32>
    %393 = math.rsqrt %392 : vector<16x1xf32>
    %394 = vector.broadcast %393 : vector<16x1xf32> to vector<16x32xf32>
    %395 = arith.mulf %390, %394 : vector<16x32xf32>
    %396 = vector.broadcast %376 : vector<1x32xf32> to vector<16x32xf32>
    %397 = arith.mulf %395, %396 : vector<16x32xf32>
    %398 = vector.broadcast %377 : vector<1x32xf32> to vector<16x32xf32>
    %399 = arith.addf %397, %398 : vector<16x32xf32>
    %c0_103 = arith.constant 0 : index
    %c0_104 = arith.constant 0 : index
    %400 = vector.load %arg19[%c0_103, %c0_104] : memref<16x32xf32, #tpu.memory_space<vmem>>, vector<16x32xf32>
    tpu.vector_store %arg19[%c0_103, %c0_104], %399 {strides = array<i32>} : memref<16x32xf32, #tpu.memory_space<vmem>>, vector<16x32xf32>,
    return
  }
  func.func @transform_0(%arg0: i32) -> (i32, i32) {
    %c0_i32 = arith.constant 0 : i32
    %c0_i32_0 = arith.constant 0 : i32
    %c0_i32_1 = arith.constant 0 : i32
    return %c0_i32, %c0_i32_0 : i32, i32
  }
  func.func @transform_1(%arg0: i32) -> (i32, i32) {
    %c0_i32 = arith.constant 0 : i32
    %c0_i32_0 = arith.constant 0 : i32
    %c0_i32_1 = arith.constant 0 : i32
    return %c0_i32, %c0_i32_0 : i32, i32
  }
  func.func @transform_2(%arg0: i32) -> (i32, i32) {
    %c0_i32 = arith.constant 0 : i32
    %c0_i32_0 = arith.constant 0 : i32
    %c0_i32_1 = arith.constant 0 : i32
    return %c0_i32, %c0_i32_0 : i32, i32
  }
  func.func @transform_3(%arg0: i32) -> (i32, i32) {
    %c0_i32 = arith.constant 0 : i32
    %c0_i32_0 = arith.constant 0 : i32
    %c0_i32_1 = arith.constant 0 : i32
    return %c0_i32, %c0_i32_0 : i32, i32
  }
  func.func @transform_4(%arg0: i32) -> (i32, i32) {
    %c0_i32 = arith.constant 0 : i32
    %c0_i32_0 = arith.constant 0 : i32
    %c0_i32_1 = arith.constant 0 : i32
    return %c0_i32, %c0_i32_0 : i32, i32
  }
  func.func @transform_5(%arg0: i32) -> (i32, i32) {
    %c0_i32 = arith.constant 0 : i32
    %c0_i32_0 = arith.constant 0 : i32
    %c0_i32_1 = arith.constant 0 : i32
    return %c0_i32, %c0_i32_0 : i32, i32
  }
  func.func @transform_6(%arg0: i32) -> (i32, i32) {
    %c0_i32 = arith.constant 0 : i32
    %c0_i32_0 = arith.constant 0 : i32
    %c0_i32_1 = arith.constant 0 : i32
    return %c0_i32, %c0_i32_0 : i32, i32
  }
  func.func @transform_7(%arg0: i32) -> (i32, i32) {
    %c0_i32 = arith.constant 0 : i32
    %c0_i32_0 = arith.constant 0 : i32
    %c0_i32_1 = arith.constant 0 : i32
    return %c0_i32, %c0_i32_0 : i32, i32
  }
  func.func @transform_8(%arg0: i32) -> (i32, i32) {
    %c0_i32 = arith.constant 0 : i32
    %c0_i32_0 = arith.constant 0 : i32
    %c0_i32_1 = arith.constant 0 : i32
    return %c0_i32, %c0_i32_0 : i32, i32
  }
  func.func @transform_9(%arg0: i32) -> (i32, i32) {
    %c0_i32 = arith.constant 0 : i32
    %c0_i32_0 = arith.constant 0 : i32
    %c0_i32_1 = arith.constant 0 : i32
    return %c0_i32, %c0_i32_0 : i32, i32
  }
  func.func @transform_10(%arg0: i32) -> (i32, i32) {
    %c0_i32 = arith.constant 0 : i32
    %c0_i32_0 = arith.constant 0 : i32
    %c0_i32_1 = arith.constant 0 : i32
    return %c0_i32, %c0_i32_0 : i32, i32
  }
  func.func @transform_11(%arg0: i32) -> (i32, i32) {
    %c0_i32 = arith.constant 0 : i32
    %c0_i32_0 = arith.constant 0 : i32
    %c0_i32_1 = arith.constant 0 : i32
    return %c0_i32, %c0_i32_0 : i32, i32
  }
  func.func @transform_12(%arg0: i32) -> (i32, i32) {
    %c0_i32 = arith.constant 0 : i32
    %c0_i32_0 = arith.constant 0 : i32
    %c0_i32_1 = arith.constant 0 : i32
    return %c0_i32, %c0_i32_0 : i32, i32
  }
  func.func @transform_13(%arg0: i32) -> (i32, i32) {
    %c0_i32 = arith.constant 0 : i32
    %c0_i32_0 = arith.constant 0 : i32
    %c0_i32_1 = arith.constant 0 : i32
    return %c0_i32, %c0_i32_0 : i32, i32
  }
  func.func @transform_14(%arg0: i32) -> (i32, i32) {
    %c0_i32 = arith.constant 0 : i32
    %c0_i32_0 = arith.constant 0 : i32
    %c0_i32_1 = arith.constant 0 : i32
    return %c0_i32, %c0_i32_0 : i32, i32
  }
  func.func @transform_15(%arg0: i32) -> (i32, i32) {
    %c0_i32 = arith.constant 0 : i32
    %c0_i32_0 = arith.constant 0 : i32
    %c0_i32_1 = arith.constant 0 : i32
    return %c0_i32, %c0_i32_0 : i32, i32
  }
  func.func @transform_16(%arg0: i32) -> (i32, i32) {
    %c0_i32 = arith.constant 0 : i32
    %c0_i32_0 = arith.constant 0 : i32
    %c0_i32_1 = arith.constant 0 : i32
    return %c0_i32, %c0_i32_0 : i32, i32
  }
  func.func @transform_17(%arg0: i32) -> (i32, i32) {
    %c0_i32 = arith.constant 0 : i32
    %c0_i32_0 = arith.constant 0 : i32
    %c0_i32_1 = arith.constant 0 : i32
    return %c0_i32, %c0_i32_0 : i32, i32
  }
  func.func @transform_18(%arg0: i32) -> (i32, i32) {
    %c0_i32 = arith.constant 0 : i32
    %c0_i32_0 = arith.constant 0 : i32
    %c0_i32_1 = arith.constant 0 : i32
    return %c0_i32, %c0_i32_0 : i32, i32
  }
}

</mosaic_0001>

<bundles_post_ra>
// kernel: tpu_custom_call.1
= control target key start
LH: loop header
LB: loop body
LE: loop exit
PB: predicated region body
PF: predicated region fallthrough
CT: control target
= control target key end

     0   :  { %s3129_s0 = inlined_call_operand.vmem [shape: f32[32,32], index: 0, kind: input, shape index: {}]   ;;  %s3130_s1 = inlined_call_operand.vmem [shape: f32[16,32], index: 1, kind: input, shape index: {}]   ;;  %s3131_s2 = inlined_call_operand.hbm [shape: bf16[32,96], index: 2, kind: input, shape index: {}]   ;;  %s3132_s3 = inlined_call_operand.hbm [shape: f32[1,96], index: 3, kind: input, shape index: {}]   ;;  %s3133_s4 = inlined_call_operand.hbm [shape: bf16[32,32], index: 4, kind: input, shape index: {}]   ;;  %s3134_s5 = inlined_call_operand.hbm [shape: f32[1,32], index: 5, kind: input, shape index: {}]   ;;  %s3135_s6 = inlined_call_operand.hbm [shape: bf16[32,32], index: 6, kind: input, shape index: {}]   ;;  %s3136_s7 = inlined_call_operand.hbm [shape: f32[1,32], index: 7, kind: input, shape index: {}]   ;;  %s3137_s8 = inlined_call_operand.hbm [shape: bf16[32,64], index: 8, kind: input, shape index: {}]   ;;  %s3138_s9 = inlined_call_operand.hbm [shape: f32[1,64], index: 9, kind: input, shape index: {}]   ;;  %s3139_s10 = inlined_call_operand.hbm [shape: bf16[32,32], index: 10, kind: input, shape index: {}]   ;;  %s3140_s11 = inlined_call_operand.vmem [shape: f32[1,32], index: 11, kind: input, shape index: {}]   ;;  %s3141_s12 = inlined_call_operand.hbm [shape: bf16[32,64], index: 12, kind: input, shape index: {}]   ;;  %s3142_s13 = inlined_call_operand.vmem [shape: f32[1,64], index: 13, kind: input, shape index: {}]   ;;  %s3143_s14 = inlined_call_operand.vmem [shape: bf16[64,32], index: 14, kind: input, shape index: {}]   ;;  %s3144_s15 = inlined_call_operand.vmem [shape: f32[1,32], index: 15, kind: input, shape index: {}]   ;;  %s3145_s16 = inlined_call_operand.vmem [shape: f32[3,32], index: 16, kind: input, shape index: {}]   ;;  %s3146_s17 = inlined_call_operand.vmem [shape: f32[3,32], index: 17, kind: input, shape index: {}]   ;;  %s3147_s18 = inlined_call_operand.hbm [shape: f32[16,32], index: 18, kind: output, shape index: {}]  }
   0x1   :  { %3150 = sst [smem:[#allocation27_spill]] %s3129_s0 }
   0x2   :  { %3151 = sst [smem:[#allocation28_spill]] %s3130_s1 }
   0x3   :  { %3152 = sst [smem:[#allocation29_spill]] %s3131_s2 }
   0x4   :  { %23 = vsyncpa [#allocation3], 0 }
   0x5   :  { %24 = vsyncpa [#allocation6], 0 }
   0x6   :  { %25 = vsyncpa [#allocation9], 0 }
   0x7   :  { %26 = vsyncpa [#allocation12], 0 }
   0x8   :  { %27 = vsyncpa [#allocation15], 0 }
   0x9   :  { %28 = vsyncpa [#allocation18], 0  ;;  %s52_s29 = sshll.u32 %s3132_s3, 4  ;;  %s53_s29 = int_to_ptr.hbm [resolvable:$true] %s52_s29 }
   0xa   :  { %29 = vsyncpa [#allocation4], 0  ;;  %s2514_s30 = smov [#allocation5]   ;;  %s76_s20 = sshll.u32 %s3134_s5, 4  ;;  %s77_s20 = int_to_ptr.hbm [resolvable:$true] %s76_s20 }
   0xb   :  { %s54_s0 = sshll.u32 %s2514_s30, 4  ;;  %s2515_s21 = smov [#allocation8]   ;;  %s55_s0 = int_to_ptr.vmem [resolvable:$true] %s54_s0 }
   0xc   :  { %57 = dma.hbm_to_vmem [thread:$0]  %s53_s29, 16, %s55_s0, [#allocation6]  }
   0xd   :  { %s78_s22 = sshll.u32 %s2515_s21, 4  ;;  %s100_s24 = sshll.u32 %s3136_s7, 4  ;;  %s79_s22 = int_to_ptr.vmem [resolvable:$true] %s78_s22  ;;  %s101_s24 = int_to_ptr.hbm [resolvable:$true] %s100_s24 }
   0xe   :  { %81 = dma.hbm_to_vmem [thread:$0]  %s77_s20, 16, %s79_s22, [#allocation9]  }
   0xf   :  { %s124_s26 = sshll.u32 %s3138_s9, 4  ;;  %s2516_s27 = smov [#allocation11]   ;;  %s125_s26 = int_to_ptr.hbm [resolvable:$true] %s124_s26 }
  0x10   :  { %s102_s28 = sshll.u32 %s2516_s27, 4  ;;  %s2517_s5 = smov [#allocation14]   ;;  %s103_s28 = int_to_ptr.vmem [resolvable:$true] %s102_s28 }
  0x11   :  { %105 = dma.hbm_to_vmem [thread:$0]  %s101_s24, 16, %s103_s28, [#allocation12]  }
  0x12   :  { %s126_s29 = sshll.u32 %s2517_s5, 4  ;;  %s3153_s19 = sld [smem:[#allocation29_spill]]  ;;  %s127_s29 = int_to_ptr.vmem [resolvable:$true] %s126_s29 }
  0x13   :  { %129 = dma.hbm_to_vmem [thread:$0]  %s125_s26, 16, %s127_s29, [#allocation15]  }
  0x14   :  { %s2518_s7 = smov [#allocation2]   ;;  %s62_s9 = sshll.u32 %s3133_s4, 4  ;;  %s63_s9 = int_to_ptr.hbm [resolvable:$true] %s62_s9 }
  0x15   :  { %s40_s20 = sshll.u32 %s2518_s7, 4  ;;  %s2519_s2 = smov 64   ;;  %s41_s20 = int_to_ptr.vmem [resolvable:$true] %s40_s20 }
  0x16   :  { %s2520_s23 = smov 4   ;;  %s2521_s24 = smov [#allocation7]  }
  0x17   :  { %s64_s3 = sshll.u32 %s2521_s24, 4  ;;  %s86_s26 = sshll.u32 %s3135_s6, 4  ;;  %s65_s3 = int_to_ptr.vmem [resolvable:$true] %s64_s3  ;;  %s87_s26 = int_to_ptr.hbm [resolvable:$true] %s86_s26 }
  0x18   :  { %s38_s1 = sshll.u32 %s3153_s19, 4  ;;  %s110_s5 = sshll.u32 %s3137_s8, 4  ;;  %s39_s1 = int_to_ptr.hbm [resolvable:$true] %s38_s1  ;;  %s111_s5 = int_to_ptr.hbm [resolvable:$true] %s110_s5 }
  0x19   :  { %46 = dma.hbm_to_vmem [thread:$0]  %s39_s1, 256, %s41_s20, [#allocation3], %s2519_s2, %s2519_s2, %s2520_s23  }
  0x1a   :  { %70 = dma.hbm_to_vmem [thread:$0]  %s63_s9, 256, %s65_s3, [#allocation6], %s2519_s2, %s2519_s2, %s2520_s23  }
  0x1b   :  { %s2522_s29 = smov [#allocation10]   ;;  %s2523_s0 = smov [#allocation13]  }
  0x1c   :  { %s88_s30 = sshll.u32 %s2522_s29, 4  ;;  %s112_s6 = sshll.u32 %s2523_s0, 4  ;;  %s89_s30 = int_to_ptr.vmem [resolvable:$true] %s88_s30  ;;  %s113_s6 = int_to_ptr.vmem [resolvable:$true] %s112_s6 }
  0x1d   :  { %94 = dma.hbm_to_vmem [thread:$0]  %s87_s26, 256, %s89_s30, [#allocation9], %s2519_s2, %s2519_s2, %s2520_s23  }
  0x1e   :  { %s134_s7 = sshll.u32 %s3139_s10, 4  ;;  %s149_s21 = sshll.u32 %s3141_s12, 4  ;;  %s135_s7 = int_to_ptr.hbm [resolvable:$true] %s134_s7  ;;  %s150_s21 = int_to_ptr.hbm [resolvable:$true] %s149_s21 }
  0x1f   :  { %118 = dma.hbm_to_vmem [thread:$0]  %s111_s5, 256, %s113_s6, [#allocation12], %s2519_s2, %s2519_s2, %s2520_s23  }
  0x20   :  { %s2524_s22 = smov [#allocation16]   ;;  %s2525_s24 = smov [#allocation17]  }
  0x21   :  { %s136_s9 = sshll.u32 %s2524_s22, 4  ;;  %s151_s10 = sshll.u32 %s2525_s24, 4  ;;  %s137_s9 = int_to_ptr.vmem [resolvable:$true] %s136_s9  ;;  %s152_s10 = int_to_ptr.vmem [resolvable:$true] %s151_s10 }
  0x22   :  { %142 = dma.hbm_to_vmem [thread:$0]  %s135_s7, 256, %s137_s9, [#allocation15], %s2519_s2, %s2519_s2, %s2520_s23  }
  0x23   :  { %157 = dma.hbm_to_vmem [thread:$0]  %s150_s21, 256, %s152_s10, [#allocation18], %s2519_s2, %s2519_s2, %s2520_s23  }
  0x24   :  { %2500 = dma.done.wait [#allocation3], 256  }
  0x25   :  { %2501 = vsyncadd [#allocation3], 4294967040 }
  0x26   :  { %2502 = dma.done.wait [#allocation6], 272  }
  0x27   :  { %2503 = vsyncadd [#allocation6], 4294967024 }
  0x28   :  { %2504 = dma.done.wait [#allocation9], 272  }
  0x29   :  { %2505 = vsyncadd [#allocation9], 4294967024 }
  0x2a   :  { %2506 = dma.done.wait [#allocation12], 272  }
  0x2b   :  { %2507 = vsyncadd [#allocation12], 4294967024 }
  0x2c   :  { %2508 = dma.done.wait [#allocation15], 272  }
  0x2d   :  { %2509 = vsyncadd [#allocation15], 4294967024 }
  0x2e   :  { %2510 = dma.done.wait [#allocation18], 256  }
  0x2f   :  { %2511 = vsyncadd [#allocation18], 4294967040  ;;  %v2675_v0 = vld [vmem:[#allocation2 + $0x8] sm:$0xff]  ;;  %v2677_v1 = vld [vmem:[#allocation2] sm:$0xff]  ;;  %s3154_s25 = sld [smem:[#allocation28_spill]]  ;;  %vm273_vm0 = vcmask 261120  }
  0x30   :  { %324 = vmatpush.bf16.msra.mxu1 %v2675_v0  ;;  %v2136_v5 = vld [vmem:[#allocation5] ss:$0 sm:$0xff]  ;;  %s2526_s26 = smov 96   ;;  %s2527_s4 = smov 112   ;;  %vm349_vm1 = vcmask 130048   ;;  %vm487_vm2 = vcmask 1043456  }
  0x31   :  { %vm441_vm3 = vcmask 64512   ;;  %v2089_v49 = vld [vmem:[#allocation13 + $0x8] sm:$0xff]  ;;  %v2088_v50 = vld [vmem:[#allocation13] sm:$0xff]  ;;  %s3155_s29 = sld [smem:[#allocation27_spill]]  ;;  %s2531_s30 = smov 8  }
  0x32   :  { %286 = vmatpush.bf16.msra.mxu0 %v2089_v49 }
  0x34   :  { %325 = vmatpush.bf16.msra.mxu1 %v2677_v1 }
  0x35   :  { %v2682_v2 = vld [vmem:[%s3154_s25] sm:$0xff]  ;;  %v2687_v3 = vld [vmem:[%s3154_s25 + $0x8] sm:$0xff] }
  0x36   :  { %v299_v4 = vpack.c.bf16 %v2687_v3, %v2682_v2  ;;  %287 = vmatpush.bf16.msra.mxu0 %v2088_v50 }
  0x37   :  { %v209_v51 = vld [vmem:[%s3155_s29] sm:$0xff]  ;;  %v210_v52 = vld [vmem:[%s3155_s29 + $0x8] sm:$0xff]  ;;  %v211_v58 = vld [vmem:[%s3155_s29 + $0x10] sm:$0xff] }
  0x38   :  { %1986 = vmatmul.msk.bf16.vlgmr.msra.gmra.mxu1 %vm273_vm0, %v299_v4  ;;  %v256_v55 = vpack.c.bf16 %v210_v52, %v209_v51  ;;  %v212_v59 = vld [vmem:[%s3155_s29 + $0x18] sm:$0xff]  ;;  %s2530_s29 = smov 128  }
  0x39   :  { %v257_v60 = vpack.c.bf16 %v212_v59, %v211_v58  ;;  %v2771_v52 = vld [vmem:[#allocation7 + $0x8] sm:$0xff] }
  0x3a   :  { %1976 = vmatmul.msk.bf16.vlgmr.msra.gmra.mxu0 %vm273_vm0, %v256_v55 }
  0x4a   :  { %1977 = vmatmul.msk.bf16.gmra.mxu0 %vm273_vm0, %v257_v60 }
  0xb5   :  { %v327_v6 = vpop.f32.mrf.mxu1 }
  0xb6   :  { %v328_v7 = vadd.f32 %v2136_v5, %v327_v6 }
  0xb8   :  { %v340_v8 = vpack.c.bf16 %v328_v7, %v328_v7 }
  0xba   :  { %v345_v9 = vunpack.c.l.b16 %v340_v8 }
  0xbc   :  { %v346_v10 = vpack.c.b16 %v345_v9, %v345_v9 }
  0xbd   :  { %v329_v11 = vpop.f32.mrf.mxu1 }
  0xbe   :  { %347 = vrot.lane.b32.xlu1 %v346_v10, %s2526_s26  ;;  %v330_v12 = vadd.f32 %v2136_v5, %v329_v11 }
  0xc0   :  { %336 = vrot.lane.b32.xlu0 %v330_v12, %s2527_s4  ;;  %v341_v13 = vpack.c.bf16 %v330_v12, %v330_v12 }
  0xc2   :  { %v370_v14 = vunpack.c.l.b16 %v341_v13 }
  0xc4   :  { %v371_v15 = vpack.c.b16 %v370_v14, %v370_v14 }
  0xc6   :  { %372 = vrot.lane.b32.xlu2 %v371_v15, %s2526_s26 }
  0xc8   :  { %334 = vrot.lane.b32.xlu0 %v328_v7, %s2527_s4 }
 0x120   :  { %v373_v16 = vpop.permute.xlu2 %372 }
 0x121   :  { %v378_v17 = vsel %vm349_vm1, %v373_v16, 0 }
 0x122   :  { %387 = vmatpush.bf16.xpose.msra.mxu3 %v378_v17 }
 0x129   :  { %1988 = vmatmul.msk.bf16.vlgmr.msra.gmra.mxu3 %vm349_vm1, %v341_v13 }
 0x130   :  { %v348_v18 = vpop.permute.xlu1 %347 }
 0x131   :  { %v354_v19 = vsel %vm349_vm1, %v348_v18, 0 }
 0x132   :  { %v337_v20 = vpop.permute.xlu0 %336  ;;  %363 = vmatpush.bf16.xpose.msra.mxu2 %v354_v19 }
 0x133   :  { %v343_v21 = vpack.c.bf16 %v337_v20, %v337_v20 }
 0x135   :  { %v418_v22 = vunpack.c.l.b16 %v343_v21 }
 0x137   :  { %v419_v23 = vpack.c.b16 %v418_v22, %v418_v22 }
 0x139   :  { %420 = vrot.lane.b32.xlu1 %v419_v23, %s2526_s26  ;;  %1987 = vmatmul.msk.bf16.vlgmr.msra.gmra.mxu2 %vm349_vm1, %v340_v8 }
 0x13a   :  { %v335_v24 = vpop.permute.xlu0 %334 }
 0x13b   :  { %v342_v25 = vpack.c.bf16 %v335_v24, %v335_v24  ;;  %v289_v24 = vpop.f32.mrf.mxu0 }
 0x13d   :  { %v394_v26 = vunpack.c.l.b16 %v342_v25 }
 0x13f   :  { %v395_v27 = vpack.c.b16 %v394_v26, %v394_v26 }
 0x141   :  { %396 = vrot.lane.b32.xlu2 %v395_v27, %s2526_s26 }
 0x149   :  { %546 = vrot.lane.b32.xlu2 %v419_v23, %s2519_s2 }
 0x19b   :  { %v397_v28 = vpop.permute.xlu2 %396 }
 0x19c   :  { %v402_v29 = vsel %vm349_vm1, %v397_v28, 0  ;;  %v291_v28 = vpop.f32.mrf.mxu0 }
 0x19d   :  { %411 = vmatpush.bf16.xpose.msrb.mxu1 %v402_v29 }
 0x1a3   :  { %v547_v30 = vpop.permute.xlu2 %546 }
 0x1a4   :  { %1989 = vmatmul.msk.bf16.vlgmr.msrb.gmra.mxu1 %vm349_vm1, %v342_v25  ;;  %v552_v34 = vsel %vm487_vm2, %v547_v30, 0  ;;  %v2137_v25 = vld [vmem:[#allocation14] ss:$0 sm:$0xff] }
 0x1a5   :  { %v2744_v29 = vadd.f32 %v2137_v25, %v291_v28 }
 0x1ab   :  { %v421_v31 = vpop.permute.xlu1 %420 }
 0x1ac   :  { %v389_v32 = vpop.f32.mrf.mxu3  ;;  %v426_v33 = vsel %vm349_vm1, %v421_v31, 0 }
 0x1ad   :  { %435 = vmatpush.bf16.xpose.msrb.mxu2 %v426_v33  ;;  %v445_v35 = vsel %vm441_vm3, %v389_v32, -inf }
 0x1ae   :  { %446 = vmax.xlane.f32.xlu0 %v445_v35 }
 0x1b4   :  { %v391_v36 = vpop.f32.mrf.mxu3  ;;  %1990 = vmatmul.msk.bf16.vlgmr.msrb.gmra.mxu2 %vm349_vm1, %v343_v21 }
 0x1b5   :  { %561 = vmatpush.bf16.msra.mxu2 %v552_v34 }
 0x1bc   :  { %v365_v37 = vpop.f32.mrf.mxu2 }
 0x1bd   :  { %v442_v38 = vsel %vm441_vm3, %v365_v37, -inf }
 0x1be   :  { %443 = vmax.xlane.f32.xlu1 %v442_v38  ;;  %v749_v38 = vpack.c.bf16 %v2744_v29, %v2744_v29 }
 0x1c4   :  { %v367_v39 = vpop.f32.mrf.mxu2 }
 0x1c5   :  { %v2084_v39 = vld [vmem:[#allocation7] sm:$0xff] }
 0x1d7   :  { %482 = vrot.lane.b32.xlu1 %v346_v10, %s2519_s2 }
 0x221   :  { %v413_v40 = vpop.f32.mrf.mxu1  ;;  %v447_v62 = vpop.xlane.xlu0 %446 }
 0x222   :  { %v448_v41 = vsel %vm441_vm3, %v413_v40, -inf  ;;  %v455_v63 = vsub.f32 %v389_v32, %v447_v62  ;;  %v294_v32 = vpop.f32.mrf.mxu0 }
 0x223   :  { %449 = vmax.xlane.f32.xlu2 %v448_v41  ;;  %v2748_v33 = vadd.f32 %v2137_v25, %v294_v32  ;;  %v759_v41 = vunpack.c.l.b16 %v749_v38 }
 0x224   :  { %v460_v4 = vmul.f32 1.442695, %v455_v63 }
 0x229   :  { %v415_v42 = vpop.f32.mrf.mxu1 }
 0x22a   :  { %v296_v34 = vpop.f32.mrf.mxu0 }
 0x22b   :  { %v2750_v35 = vadd.f32 %v2137_v25, %v296_v34 }
 0x22d   :  { %v2121_v36 = vpack.i.bf16 %v2750_v35, %v2748_v33 }
 0x231   :  { %v444_v44 = vpop.xlane.xlu1 %443 }
 0x232   :  { %v454_v46 = vsub.f32 %v365_v37, %v444_v44  ;;  %v750_v44 = vpack.c.bf16 %v2748_v33, %v2748_v33 }
 0x234   :  { %v458_v47 = vmul.f32 1.442695, %v454_v46 }
 0x236   :  { %2143 = vpow2.f32 %v458_v47  ;;  %v782_v47 = vunpack.c.l.b16 %v750_v44 }
 0x237   :  { %v437_v43 = vpop.f32.mrf.mxu2  ;;  %2145 = vpow2.f32 %v460_v4 }
 0x238   :  { %v451_v45 = vsel %vm441_vm3, %v437_v43, -inf }
 0x239   :  { %452 = vmax.xlane.f32.xlu0 %v451_v45  ;;  %v751_v45 = vpack.c.bf16 %v2750_v35, %v2750_v35 }
 0x23b   :  { %504 = vrot.lane.b32.xlu2 %v371_v15, %s2519_s2 }
 0x23c   :  { %v2144_v53 = vpop.eup %2143 }
 0x23d   :  { %v478_v57 = vpack.c.bf16 %v2144_v53, %v2144_v53  ;;  %v466_v61 = vsel %vm441_vm3, %v2144_v53, 0.0  ;;  %v2146_v8 = vpop.eup %2145 }
 0x23e   :  { %v479_v12 = vpack.c.bf16 %v2146_v8, %v2146_v8  ;;  %v469_v14 = vsel %vm441_vm3, %v2146_v8, 0.0 }
 0x23f   :  { %v439_v48 = vpop.f32.mrf.mxu2 }
 0x240   :  { %v783_v48 = vunpack.c.l.b16 %v751_v45 }
 0x242   :  { %v2769_v50 = vpack.c.b16 %v783_v48, %v782_v47 }
 0x249   :  { %v483_v54 = vpop.permute.xlu1 %482 }
 0x24a   :  { %v489_v56 = vsel %vm487_vm2, %v483_v54, 0  ;;  %v2776_v54 = vsel %vm349_vm1, %v2769_v50, 0 }
 0x24b   :  { %498 = vmatpush.bf16.msrb.mxu3 %v489_v56 }
 0x24d   :  { %525 = vrot.lane.b32.xlu0 %v395_v27, %s2519_s2  ;;  %v2742_v27 = vadd.f32 %v2137_v25, %v289_v24  ;;  %v2528_v24 = vmov 32.0  }
 0x24e   :  { %1991 = vmatmul.msk.bf16.vlgmr.msrb.gmra.mxu3 %vm441_vm3, %v478_v57 }
 0x24f   :  { %v2116_v30 = vpack.i.bf16 %v2744_v29, %v2742_v27  ;;  %v748_v37 = vpack.c.bf16 %v2742_v27, %v2742_v27  ;;  %593 = vmatpush.bf16.msra.mxu3 %v2771_v52 }
 0x253   :  { %798 = vmatpush.bf16.xpose.msrb.mxu3 %v2776_v54 }
 0x264   :  { %467 = vadd.xlane.f32.xlu2 %v466_v61 }
 0x296   :  { %v450_v5 = vpop.xlane.xlu2 %449 }
 0x297   :  { %v456_v6 = vsub.f32 %v413_v40, %v450_v5  ;;  %v758_v40 = vunpack.c.l.b16 %v748_v37 }
 0x299   :  { %v462_v7 = vmul.f32 1.442695, %v456_v6  ;;  %v2758_v42 = vpack.c.b16 %v759_v41, %v758_v40 }
 0x29b   :  { %2147 = vpow2.f32 %v462_v7 }
 0x29e   :  { %v505_v9 = vpop.permute.xlu2 %504 }
 0x29f   :  { %v510_v10 = vsel %vm487_vm2, %v505_v9, 0 }
 0x2a0   :  { %519 = vmatpush.bf16.msrb.mxu0 %v510_v10 }
 0x2a1   :  { %v2148_v11 = vpop.eup %2147 }
 0x2a2   :  { %v472_v13 = vsel %vm441_vm3, %v2148_v11, 0.0  ;;  %v480_v23 = vpack.c.bf16 %v2148_v11, %v2148_v11 }
 0x2a3   :  { %473 = vadd.xlane.f32.xlu1 %v472_v13  ;;  %1992 = vmatmul.msk.bf16.vlgmr.msrb.gmra.mxu0 %vm441_vm3, %v479_v12  ;;  %v2138_v12 = vld [vmem:[#allocation8] ss:$0 sm:$0xff] }
 0x2a4   :  { %616 = vmatpush.bf16.msra.mxu0 %v2084_v39 }
 0x2ab   :  { %470 = vadd.xlane.f32.xlu1 %v469_v14 }
 0x2ac   :  { %v453_v15 = vpop.xlane.xlu0 %452 }
 0x2ad   :  { %v457_v16 = vsub.f32 %v437_v43, %v453_v15  ;;  %v2762_v43 = vsel %vm349_vm1, %v2758_v42, 0 }
 0x2ae   :  { %774 = vmatpush.bf16.xpose.msrb.mxu2 %v2762_v43 }
 0x2af   :  { %v464_v17 = vmul.f32 1.442695, %v457_v16 }
 0x2b1   :  { %2149 = vpow2.f32 %v464_v17 }
 0x2b7   :  { %v2150_v18 = vpop.eup %2149 }
 0x2b8   :  { %v481_v19 = vpack.c.bf16 %v2150_v18, %v2150_v18  ;;  %v475_v20 = vsel %vm441_vm3, %v2150_v18, 0.0 }
 0x2b9   :  { %476 = vadd.xlane.f32.xlu0 %v475_v20 }
 0x2ba   :  { %1994 = vmatmul.msk.bf16.vlgmr.msra.gmra.mxu2 %vm441_vm3, %v481_v19 }
 0x2bf   :  { %v526_v21 = vpop.permute.xlu0 %525 }
 0x2c0   :  { %v531_v22 = vsel %vm487_vm2, %v526_v21, 0 }
 0x2c1   :  { %540 = vmatpush.bf16.msra.mxu1 %v531_v22 }
 0x2c4   :  { %1993 = vmatmul.msk.bf16.vlgmr.msra.gmra.mxu1 %vm441_vm3, %v480_v23 }
 0x2d1   :  { %v500_v26 = vpop.f32.mrf.mxu3 }
 0x2d7   :  { %v468_v49 = vpop.xlane.xlu2 %467 }
 0x2d8   :  { %2151 = vrcp.f32 %v468_v49 }
 0x2d9   :  { %v502_v31 = vpop.f32.mrf.mxu3 }
 0x2de   :  { %v2152_v55 = vpop.eup %2151 }
 0x2df   :  { %v571_v57 = vmul.f32 %v2152_v55, %v500_v26 }
 0x316   :  { %v474_v46 = vpop.xlane.xlu1 %473 }
 0x31e   :  { %v471_v51 = vpop.xlane.xlu1 %470 }
 0x31f   :  { %2153 = vrcp.f32 %v471_v51 }
 0x320   :  { %v521_v53 = vpop.f32.mrf.mxu0  ;;  %2155 = vrcp.f32 %v474_v46 }
 0x325   :  { %v2154_v56 = vpop.eup %2153 }
 0x326   :  { %v572_v58 = vmul.f32 %v2154_v56, %v521_v53  ;;  %v2156_v63 = vpop.eup %2155  ;;  %v2806_v56 = vld [vmem:[#allocation10 + $0x8] sm:$0xff] }
 0x327   :  { %712 = vmatpush.bf16.msrb.mxu1 %v2806_v56 }
 0x328   :  { %v575_v59 = vpack.c.bf16 %v572_v58, %v571_v57  ;;  %v523_v60 = vpop.f32.mrf.mxu0  ;;  %v2809_v57 = vld [vmem:[#allocation10] sm:$0xff] }
 0x32a   :  { %2004 = vmatmul.msk.bf16.vlgmr.msra.gmra.mxu0 %vm349_vm1, %v575_v59 }
 0x32b   :  { %713 = vmatpush.bf16.msrb.mxu1 %v2809_v57 }
 0x32c   :  { %v477_v61 = vpop.xlane.xlu0 %476 }
 0x32d   :  { %2157 = vrcp.f32 %v477_v61 }
 0x32e   :  { %2159 = vrcp.f32 %v2528_v24 }
 0x333   :  { %v2158_v4 = vpop.eup %2157 }
 0x33d   :  { %v563_v62 = vpop.f32.mrf.mxu2 }
 0x33e   :  { %v574_v6 = vmul.f32 %v2158_v4, %v563_v62 }
 0x341   :  { %v542_v5 = vpop.f32.mrf.mxu1 }
 0x342   :  { %v573_v7 = vmul.f32 %v2156_v63, %v542_v5 }
 0x344   :  { %v576_v8 = vpack.c.bf16 %v574_v6, %v573_v7 }
 0x345   :  { %v565_v9 = vpop.f32.mrf.mxu2 }
 0x346   :  { %1999 = vmatmul.msk.bf16.vlgmr.msra.gmra.mxu3 %vm349_vm1, %v576_v8 }
 0x349   :  { %v544_v10 = vpop.f32.mrf.mxu1 }
 0x34a   :  { %v2817_v10 = vld [vmem:[%s3145_s16] sm:$0x7] }
 0x3a7   :  { %v618_v11 = vpop.f32.mrf.mxu0 }
 0x3af   :  { %v620_v18 = vpop.f32.mrf.mxu0 }
 0x3c9   :  { %v595_v13 = vpop.f32.mrf.mxu3 }
 0x3ca   :  { %v619_v14 = vadd.f32 %v618_v11, %v595_v13 }
 0x3cc   :  { %v626_v15 = vadd.f32 %v2138_v12, %v619_v14 }
 0x3ce   :  { %v628_v16 = vadd.f32 %v626_v15, %v2682_v2  ;;  %v2160_v2 = vpop.eup %2159 }
 0x3cf   :  { %v637_v25 = vmul.f32 32.0, %v2160_v2  ;;  %vm641_vm4 = vweird.f32 %v2160_v2 }
 0x3d0   :  { %v630_v17 = vsel %vm273_vm0, %v628_v16, 0.0 }
 0x3d1   :  { %v597_v19 = vpop.f32.mrf.mxu3  ;;  %631 = vadd.xlane.f32.xlu0 %v630_v17  ;;  %v638_v26 = vsub.f32 1.0, %v637_v25  ;;  %v2820_v17 = vperm.slane %v2817_v10, 0 }
 0x3d2   :  { %v621_v20 = vadd.f32 %v620_v18, %v597_v19 }
 0x3d3   :  { %v639_v28 = vmul.f32 %v2160_v2, %v638_v26 }
 0x3d4   :  { %v627_v21 = vadd.f32 %v2138_v12, %v621_v20 }
 0x3d5   :  { %v640_v31 = vadd.f32 %v2160_v2, %v639_v28 }
 0x3d6   :  { %v629_v22 = vadd.f32 %v627_v21, %v2687_v3  ;;  %v2825_v21 = vld [vmem:[%s3146_s17] sm:$0x7] }
 0x3d7   :  { %v2789_v32 = vsel %vm641_vm4, %v2160_v2, %v640_v31  ;;  %v2828_v25 = vperm.slane %v2825_v21, 0 }
 0x3d8   :  { %v633_v23 = vsel %vm273_vm0, %v629_v22, 0.0 }
 0x3d9   :  { %634 = vadd.xlane.f32.xlu2 %v633_v23 }
 0x3f1   :  { %2117 = vrot.lane.b32.xlu2 %v2116_v30, %s2527_s4 }
 0x444   :  { %v632_v34 = vpop.xlane.xlu0 %631 }
 0x445   :  { %v643_v3 = vmul.f32 %v2789_v32, %v632_v34 }
 0x447   :  { %v645_v37 = vsub.f32 %v628_v16, %v643_v3 }
 0x449   :  { %v647_v38 = vmul.f32 %v645_v37, %v645_v37 }
 0x44b   :  { %v649_v39 = vsel %vm273_vm0, %v647_v38, 0.0 }
 0x44c   :  { %v635_v40 = vpop.xlane.xlu2 %634  ;;  %650 = vadd.xlane.f32.xlu1 %v649_v39 }
 0x44d   :  { %v644_v27 = vmul.f32 %v2789_v32, %v635_v40  ;;  %v2845_v40 = vld [vmem:[#allocation11] ss:$0 sm:$0xff] }
 0x44f   :  { %v646_v29 = vsub.f32 %v629_v22, %v644_v27 }
 0x451   :  { %v648_v30 = vmul.f32 %v646_v29, %v646_v29 }
 0x453   :  { %v652_v41 = vsel %vm273_vm0, %v648_v30, 0.0 }
 0x454   :  { %653 = vadd.xlane.f32.xlu0 %v652_v41  ;;  %v2118_v44 = vpop.permute.xlu2 %2117 }
 0x455   :  { %v2120_v45 = vunpack.i.h.bf16 %v2118_v44  ;;  %v2119_v46 = vunpack.i.l.bf16 %v2118_v44 }
 0x457   :  { %v753_v47 = vpack.c.bf16 %v2120_v45, %v2120_v45  ;;  %v752_v48 = vpack.c.bf16 %v2119_v46, %v2119_v46 }
 0x459   :  { %v807_v49 = vunpack.c.l.b16 %v753_v47  ;;  %v806_v51 = vunpack.c.l.b16 %v752_v48 }
 0x45b   :  { %v2795_v53 = vpack.c.b16 %v807_v49, %v806_v51 }
 0x45d   :  { %v2799_v55 = vsel %vm349_vm1, %v2795_v53, 0 }
 0x45e   :  { %822 = vmatpush.bf16.xpose.msrb.mxu0 %v2799_v55 }
 0x465   :  { %2122 = vrot.lane.b32.xlu1 %v2121_v36, %s2527_s4 }
 0x4bf   :  { %v651_v58 = vpop.xlane.xlu1 %650 }
 0x4c0   :  { %v655_v59 = vmul.f32 %v651_v58, %v2789_v32 }
 0x4c2   :  { %v657_v60 = vadd.f32 1e-05, %v655_v59 }
 0x4c4   :  { %2161 = vrsqrt.f32 %v657_v60  ;;  %vm665_vm6 = vweird.f32 %v657_v60 }
 0x4c7   :  { %v654_v61 = vpop.xlane.xlu0 %653 }
 0x4c8   :  { %v656_v62 = vmul.f32 %v654_v61, %v2789_v32 }
 0x4ca   :  { %v2162_v63 = vpop.eup %2161  ;;  %v658_v4 = vadd.f32 1e-05, %v656_v62 }
 0x4cb   :  { %v660_v33 = vmul.f32 %v2162_v63, %v657_v60  ;;  %vm666_vm5 = vweird.f32 %v2162_v63 }
 0x4cc   :  { %2163 = vrsqrt.f32 %v658_v4  ;;  %vm667_vm7 = vmor %vm665_vm6, %vm666_vm5  ;;  %vm675_vm9 = vweird.f32 %v658_v4  ;;  %vm1144_vm5 = vcmask 523264  }
 0x4cd   :  { %v661_v35 = vmul.f32 %v2162_v63, %v660_v33 }
 0x4cf   :  { %v662_v36 = vmul.f32 0.5, %v661_v35 }
 0x4d1   :  { %v663_v5 = vsub.f32 1.5, %v662_v36 }
 0x4d2   :  { %v2164_v6 = vpop.eup %2163 }
 0x4d3   :  { %v664_v7 = vmul.f32 %v2162_v63, %v663_v5  ;;  %v670_v8 = vmul.f32 %v2164_v6, %v658_v4  ;;  %vm676_vm8 = vweird.f32 %v2164_v6 }
 0x4d4   :  { %vm677_vm10 = vmor %vm675_vm9, %vm676_vm8 }
 0x4d5   :  { %v671_v9 = vmul.f32 %v2164_v6, %v670_v8  ;;  %v668_v11 = vsel %vm667_vm7, %v2162_v63, %v664_v7 }
 0x4d6   :  { %v679_v18 = vmul.f32 %v668_v11, %v645_v37 }
 0x4d7   :  { %v672_v12 = vmul.f32 0.5, %v671_v9  ;;  %v2123_v13 = vpop.permute.xlu1 %2122 }
 0x4d8   :  { %v2125_v14 = vunpack.i.h.bf16 %v2123_v13  ;;  %v2124_v15 = vunpack.i.l.bf16 %v2123_v13  ;;  %v682_v26 = vmul.f32 %v2820_v17, %v679_v18 }
 0x4d9   :  { %v673_v16 = vsub.f32 1.5, %v672_v12 }
 0x4da   :  { %v755_v19 = vpack.c.bf16 %v2125_v14, %v2125_v14  ;;  %v754_v20 = vpack.c.bf16 %v2124_v15, %v2124_v15  ;;  %v2837_v37 = vadd.f32 %v2828_v25, %v682_v26 }
 0x4db   :  { %v674_v22 = vmul.f32 %v2164_v6, %v673_v16 }
 0x4dc   :  { %v831_v23 = vunpack.c.l.b16 %v755_v19  ;;  %v830_v24 = vunpack.c.l.b16 %v754_v20 }
 0x4dd   :  { %v678_v2 = vsel %vm677_vm10, %v2164_v6, %v674_v22 }
 0x4de   :  { %v680_v28 = vmul.f32 %v678_v2, %v646_v29  ;;  %v832_v31 = vpack.c.b16 %v831_v23, %v830_v24 }
 0x4e0   :  { %v683_v34 = vmul.f32 %v2820_v17, %v680_v28  ;;  %v2833_v3 = vsel %vm349_vm1, %v832_v31, 0 }
 0x4e1   :  { %846 = vmatpush.bf16.xpose.msra.mxu1 %v2833_v3 }
 0x4e2   :  { %v2840_v38 = vadd.f32 %v2828_v25, %v683_v34 }
 0x4e4   :  { %v687_v39 = vpack.c.bf16 %v2840_v38, %v2837_v37 }
 0x4e6   :  { %2013 = vmatmul.msk.bf16.vlgmr.msrb.gmra.mxu1 %vm273_vm0, %v687_v39 }
 0x563   :  { %v715_v27 = vpop.f32.mrf.mxu1 }
 0x564   :  { %v716_v29 = vadd.f32 %v2845_v40, %v715_v27 }
 0x566   :  { %v728_v30 = vpack.c.bf16 %v716_v29, %v716_v29 }
 0x568   :  { %2014 = vmatmul.msk.bf16.vlgmr.msrb.gmra.mxu2 %vm349_vm1, %v728_v30 }
 0x56b   :  { %v717_v41 = vpop.f32.mrf.mxu1 }
 0x56c   :  { %v718_v44 = vadd.f32 %v2845_v40, %v717_v41 }
 0x56e   :  { %v729_v45 = vpack.c.bf16 %v718_v44, %v718_v44  ;;  %v2126_v46 = vpack.i.bf16 %v718_v44, %v716_v29 }
 0x570   :  { %2127 = vrot.lane.b32.xlu0 %v2126_v46, %s2527_s4  ;;  %2015 = vmatmul.msk.bf16.vlgmr.msrb.gmra.mxu3 %vm349_vm1, %v729_v45 }
 0x578   :  { %892 = vrot.lane.b32.xlu0 %v2758_v42, %s2526_s26 }
 0x5e2   :  { %v2128_v47 = vpop.permute.xlu0 %2127 }
 0x5e3   :  { %v2130_v48 = vunpack.i.h.bf16 %v2128_v47  ;;  %v2129_v49 = vunpack.i.l.bf16 %v2128_v47  ;;  %v2885_v47 = vld [vmem:[#allocation16 + $0x8] sm:$0xff] }
 0x5e5   :  { %v731_v51 = vpack.c.bf16 %v2130_v48, %v2130_v48  ;;  %v730_v58 = vpack.c.bf16 %v2129_v49, %v2129_v49  ;;  %v2890_v49 = vld [vmem:[#allocation16] sm:$0xff] }
 0x5e7   :  { %2016 = vmatmul.msk.bf16.vlgmr.msrb.gmra.mxu0 %vm349_vm1, %v730_v58  ;;  %2017 = vmatmul.msk.bf16.vlgmr.msra.gmra.mxu1 %vm349_vm1, %v731_v51 }
 0x5ea   :  { %v2856_v59 = vpop.permute.xlu0 %892 }
 0x5eb   :  { %v776_v60 = vpop.f32.mrf.mxu2  ;;  %905 = vmatpush.bf16.msra.mxu2 %v2856_v59 }
 0x5ec   :  { %v852_v61 = vsel %vm349_vm1, %v776_v60, -inf }
 0x5ed   :  { %853 = vmax.xlane.f32.xlu2 %v852_v61 }
 0x5ef   :  { %994 = vmatpush.bf16.msrb.mxu2 %v2885_v47 }
 0x5f3   :  { %v778_v62 = vpop.f32.mrf.mxu2  ;;  %v800_v63 = vpop.f32.mrf.mxu3 }
 0x5f4   :  { %v855_v42 = vsel %vm349_vm1, %v800_v63, -inf }
 0x5f5   :  { %856 = vmax.xlane.f32.xlu0 %v855_v42 }
 0x5fb   :  { %v802_v4 = vpop.f32.mrf.mxu3 }
 0x609   :  { %949 = vrot.lane.b32.xlu0 %v832_v31, %s2526_s26 }
 0x660   :  { %v854_v33 = vpop.xlane.xlu2 %853 }
 0x661   :  { %v864_v35 = vsub.f32 %v776_v60, %v854_v33 }
 0x663   :  { %v868_v36 = vmul.f32 1.442695, %v864_v35 }
 0x664   :  { %v824_v5 = vpop.f32.mrf.mxu0  ;;  %v848_v6 = vpop.f32.mrf.mxu1 }
 0x665   :  { %2165 = vpow2.f32 %v868_v36  ;;  %v858_v7 = vsel %vm349_vm1, %v824_v5, -inf  ;;  %v861_v8 = vsel %vm349_vm1, %v848_v6, -inf }
 0x666   :  { %859 = vmax.xlane.f32.xlu1 %v858_v7  ;;  %862 = vmax.xlane.f32.xlu2 %v861_v8 }
 0x668   :  { %v857_v9 = vpop.xlane.xlu0 %856 }
 0x669   :  { %v865_v11 = vsub.f32 %v800_v63, %v857_v9 }
 0x66b   :  { %v2166_v12 = vpop.eup %2165  ;;  %v870_v13 = vmul.f32 1.442695, %v865_v11 }
 0x66c   :  { %v888_v14 = vpack.c.bf16 %v2166_v12, %v2166_v12  ;;  %v826_v15 = vpop.f32.mrf.mxu0  ;;  %v850_v16 = vpop.f32.mrf.mxu1  ;;  %v876_v22 = vsel %vm349_vm1, %v2166_v12, 0.0 }
 0x66d   :  { %2167 = vpow2.f32 %v870_v13  ;;  %v2898_v13 = vld [vmem:[%s3140_s11] ss:$0 sm:$0xff] }
 0x66e   :  { %2018 = vmatmul.msk.bf16.vlgmr.msra.gmra.mxu2 %vm349_vm1, %v888_v14 }
 0x66f   :  { %1224 = vmatpush.bf16.msra.mxu2 %v2675_v0 }
 0x673   :  { %v2168_v18 = vpop.eup %2167  ;;  %1225 = vmatpush.bf16.msra.mxu2 %v2677_v1 }
 0x674   :  { %v879_v19 = vsel %vm349_vm1, %v2168_v18, 0.0  ;;  %v889_v45 = vpack.c.bf16 %v2168_v18, %v2168_v18 }
 0x675   :  { %880 = vadd.xlane.f32.xlu0 %v879_v19 }
 0x67b   :  { %v2866_v20 = vpop.permute.xlu0 %949 }
 0x67c   :  { %962 = vmatpush.bf16.msrb.mxu1 %v2866_v20 }
 0x67e   :  { %930 = vrot.lane.b32.xlu2 %v2795_v53, %s2526_s26 }
 0x67f   :  { %911 = vrot.lane.b32.xlu1 %v2769_v50, %s2526_s26 }
 0x6a9   :  { %877 = vadd.xlane.f32.xlu1 %v876_v22 }
 0x6d9   :  { %v860_v23 = vpop.xlane.xlu1 %859  ;;  %v863_v24 = vpop.xlane.xlu2 %862 }
 0x6da   :  { %v866_v2 = vsub.f32 %v824_v5, %v860_v23  ;;  %v867_v26 = vsub.f32 %v848_v6, %v863_v24 }
 0x6dc   :  { %v872_v28 = vmul.f32 1.442695, %v866_v2  ;;  %v874_v31 = vmul.f32 1.442695, %v867_v26 }
 0x6de   :  { %2169 = vpow2.f32 %v872_v28 }
 0x6df   :  { %2171 = vpow2.f32 %v874_v31 }
 0x6e1   :  { %v2874_v34 = vpop.permute.xlu2 %930 }
 0x6e2   :  { %943 = vmatpush.bf16.msra.mxu0 %v2874_v34 }
 0x6e4   :  { %v2170_v39 = vpop.eup %2169 }
 0x6e5   :  { %v2172_v53 = vpop.eup %2171  ;;  %v890_v27 = vpack.c.bf16 %v2170_v39, %v2170_v39  ;;  %v882_v50 = vsel %vm349_vm1, %v2170_v39, 0.0 }
 0x6e6   :  { %v891_v29 = vpack.c.bf16 %v2172_v53, %v2172_v53  ;;  %883 = vadd.xlane.f32.xlu2 %v882_v50  ;;  %v885_v30 = vsel %vm349_vm1, %v2172_v53, 0.0 }
 0x6e7   :  { %886 = vadd.xlane.f32.xlu1 %v885_v30  ;;  %2020 = vmatmul.msk.bf16.vlgmr.msra.gmra.mxu0 %vm349_vm1, %v890_v27 }
 0x6e8   :  { %2021 = vmatmul.msk.bf16.vlgmr.msrb.gmra.mxu1 %vm349_vm1, %v891_v29  ;;  %v881_v35 = vpop.xlane.xlu0 %880 }
 0x6f1   :  { %v2881_v41 = vpop.permute.xlu1 %911  ;;  %v907_v44 = vpop.f32.mrf.mxu2 }
 0x6f2   :  { %924 = vmatpush.bf16.msra.mxu3 %v2881_v41 }
 0x6f5   :  { %2019 = vmatmul.msk.bf16.vlgmr.msra.gmra.mxu3 %vm349_vm1, %v889_v45 }
 0x6f6   :  { %1017 = vmatpush.bf16.msrb.mxu3 %v2890_v49 }
 0x6f9   :  { %v909_v46 = vpop.f32.mrf.mxu2 }
 0x71c   :  { %v878_v48 = vpop.xlane.xlu1 %877 }
 0x759   :  { %v884_v51 = vpop.xlane.xlu2 %883 }
 0x75a   :  { %v887_v58 = vpop.xlane.xlu1 %886  ;;  %2173 = vrcp.f32 %v884_v51 }
 0x75b   :  { %2175 = vrcp.f32 %v887_v58  ;;  %v2914_v58 = vld [vmem:[#allocation17] sm:$0xff] }
 0x75c   :  { %2177 = vrcp.f32 %v878_v48 }
 0x75d   :  { %2179 = vrcp.f32 %v881_v35 }
 0x760   :  { %v2174_v60 = vpop.eup %2173 }
 0x761   :  { %v2176_v62 = vpop.eup %2175 }
 0x762   :  { %v2178_v36 = vpop.eup %2177 }
 0x763   :  { %v2180_v5 = vpop.eup %2179  ;;  %v972_v7 = vmul.f32 %v2178_v36, %v907_v44 }
 0x764   :  { %v945_v61 = vpop.f32.mrf.mxu0 }
 0x765   :  { %v974_v63 = vmul.f32 %v2174_v60, %v945_v61  ;;  %v964_v42 = vpop.f32.mrf.mxu1 }
 0x766   :  { %v975_v4 = vmul.f32 %v2176_v62, %v964_v42 }
 0x768   :  { %v977_v33 = vpack.c.bf16 %v975_v4, %v974_v63 }
 0x76a   :  { %2026 = vmatmul.msk.bf16.vlgmr.msrb.gmra.mxu2 %vm349_vm1, %v977_v33 }
 0x76c   :  { %v947_v0 = vpop.f32.mrf.mxu0 }
 0x76d   :  { %v966_v1 = vpop.f32.mrf.mxu1 }
 0x778   :  { %v926_v6 = vpop.f32.mrf.mxu3 }
 0x779   :  { %v973_v8 = vmul.f32 %v2180_v5, %v926_v6 }
 0x77b   :  { %v976_v9 = vpack.c.bf16 %v973_v8, %v972_v7 }
 0x77d   :  { %2031 = vmatmul.msk.bf16.vlgmr.msrb.gmra.mxu3 %vm349_vm1, %v976_v9  ;;  %v2919_v9 = vperm.slane %v2817_v10, 1 }
 0x780   :  { %v928_v11 = vpop.f32.mrf.mxu3 }
 0x7ed   :  { %v996_v12 = vpop.f32.mrf.mxu2 }
 0x7f5   :  { %v998_v22 = vpop.f32.mrf.mxu2 }
 0x800   :  { %v1019_v14 = vpop.f32.mrf.mxu3 }
 0x801   :  { %v1020_v15 = vadd.f32 %v1019_v14, %v996_v12 }
 0x803   :  { %v1027_v16 = vadd.f32 %v2898_v13, %v1020_v15  ;;  %v2922_v15 = vperm.slane %v2825_v21, 1 }
 0x805   :  { %v1029_v18 = vadd.f32 %v1027_v16, %v2837_v37 }
 0x807   :  { %v1031_v19 = vsel %vm273_vm0, %v1029_v18, 0.0 }
 0x808   :  { %v1021_v23 = vpop.f32.mrf.mxu3  ;;  %1032 = vadd.xlane.f32.xlu0 %v1031_v19 }
 0x809   :  { %v1022_v24 = vadd.f32 %v1021_v23, %v998_v22 }
 0x80b   :  { %v1028_v2 = vadd.f32 %v2898_v13, %v1022_v24 }
 0x80d   :  { %v1030_v26 = vadd.f32 %v1028_v2, %v2840_v38  ;;  %v2910_v38 = vld [vmem:[#allocation17 + $0x8] sm:$0xff]  ;;  %v2932_v2 = vld [vmem:[%s3143_s14 + $0x18] sm:$0xff] }
 0x80e   :  { %1106 = vmatpush.bf16.msrb.mxu0 %v2910_v38  ;;  %1152 = vmatpush.bf16.msra.mxu1 %v2932_v2 }
 0x80f   :  { %v1034_v28 = vsel %vm273_vm0, %v1030_v26, 0.0 }
 0x810   :  { %1035 = vadd.xlane.f32.xlu2 %v1034_v28  ;;  %v2944_v28 = vld [vmem:[%s3143_s14 + $0x8] sm:$0xff] }
 0x812   :  { %1107 = vmatpush.bf16.msrb.mxu0 %v2914_v58 }
 0x87b   :  { %v1033_v31 = vpop.xlane.xlu0 %1032 }
 0x87c   :  { %v1037_v39 = vmul.f32 %v1033_v31, %v2789_v32  ;;  %v2950_v31 = vld [vmem:[%s3143_s14] sm:$0xff] }
 0x87e   :  { %v1039_v53 = vsub.f32 %v1029_v18, %v1037_v39 }
 0x880   :  { %v1041_v27 = vmul.f32 %v1039_v53, %v1039_v53 }
 0x882   :  { %v1043_v37 = vsel %vm273_vm0, %v1041_v27, 0.0 }
 0x883   :  { %1044 = vadd.xlane.f32.xlu1 %v1043_v37  ;;  %v1036_v50 = vpop.xlane.xlu2 %1035 }
 0x884   :  { %v1038_v29 = vmul.f32 %v1036_v50, %v2789_v32 }
 0x886   :  { %v1040_v30 = vsub.f32 %v1030_v26, %v1038_v29  ;;  %v2938_v26 = vld [vmem:[%s3143_s14 + $0x10] sm:$0xff] }
 0x887   :  { %1153 = vmatpush.bf16.msra.mxu1 %v2938_v26 }
 0x888   :  { %v1042_v44 = vmul.f32 %v1040_v30, %v1040_v30 }
 0x88a   :  { %v1046_v45 = vsel %vm273_vm0, %v1042_v44, 0.0 }
 0x88b   :  { %1047 = vadd.xlane.f32.xlu0 %v1046_v45  ;;  %1154 = vmatpush.bf16.msra.mxu1 %v2944_v28  ;;  %v2964_v45 = vld [vmem:[%s3144_s15] ss:$0 sm:$0xff] }
 0x88f   :  { %1155 = vmatpush.bf16.msra.mxu1 %v2950_v31 }
 0x8f6   :  { %v1045_v46 = vpop.xlane.xlu1 %1044 }
 0x8f7   :  { %v1049_v48 = vmul.f32 %v1045_v46, %v2789_v32 }
 0x8f9   :  { %v1051_v51 = vadd.f32 1e-05, %v1049_v48 }
 0x8fb   :  { %2181 = vrsqrt.f32 %v1051_v51  ;;  %vm1059_vm12 = vweird.f32 %v1051_v51 }
 0x8fe   :  { %v1048_v60 = vpop.xlane.xlu0 %1047 }
 0x8ff   :  { %v1050_v61 = vmul.f32 %v1048_v60, %v2789_v32 }
 0x901   :  { %v2182_v62 = vpop.eup %2181  ;;  %v1052_v63 = vadd.f32 1e-05, %v1050_v61 }
 0x902   :  { %v1054_v42 = vmul.f32 %v2182_v62, %v1051_v51  ;;  %vm1060_vm11 = vweird.f32 %v2182_v62 }
 0x903   :  { %2183 = vrsqrt.f32 %v1052_v63  ;;  %vm1061_vm13 = vmor %vm1059_vm12, %vm1060_vm11  ;;  %vm1069_vm15 = vweird.f32 %v1052_v63 }
 0x904   :  { %v1055_v4 = vmul.f32 %v2182_v62, %v1054_v42 }
 0x906   :  { %v1056_v33 = vmul.f32 0.5, %v1055_v4 }
 0x908   :  { %v1057_v0 = vsub.f32 1.5, %v1056_v33 }
 0x909   :  { %v2184_v1 = vpop.eup %2183 }
 0x90a   :  { %v1058_v35 = vmul.f32 %v2182_v62, %v1057_v0  ;;  %v1064_v36 = vmul.f32 %v2184_v1, %v1052_v63  ;;  %vm1070_vm14 = vweird.f32 %v2184_v1 }
 0x90b   :  { %vm1071_vm4 = vmor %vm1069_vm15, %vm1070_vm14 }
 0x90c   :  { %v1065_v5 = vmul.f32 %v2184_v1, %v1064_v36  ;;  %v1062_v6 = vsel %vm1061_vm13, %v2182_v62, %v1058_v35 }
 0x90d   :  { %v1073_v11 = vmul.f32 %v1062_v6, %v1039_v53  ;;  %v2956_v53 = vld [vmem:[%s3142_s13] ss:$0 sm:$0xff]  ;;  %s2529_s13 = smov [#allocation19]  }
 0x90e   :  { %v1066_v7 = vmul.f32 0.5, %v1065_v5  ;;  %s1948_s15 = sshll.u32 %s2529_s13, 4  ;;  %s1949_s15 = int_to_ptr.vmem [resolvable:$true] %s1948_s15 }
 0x90f   :  { %v1076_v16 = vmul.f32 %v2919_v9, %v1073_v11 }
 0x910   :  { %v1067_v8 = vsub.f32 1.5, %v1066_v7 }
 0x911   :  { %v1079_v22 = vadd.f32 %v2922_v15, %v1076_v16 }
 0x912   :  { %v1068_v12 = vmul.f32 %v2184_v1, %v1067_v8 }
 0x914   :  { %v1072_v14 = vsel %vm1071_vm4, %v2184_v1, %v1068_v12 }
 0x915   :  { %v1074_v18 = vmul.f32 %v1072_v14, %v1040_v30 }
 0x917   :  { %v1077_v19 = vmul.f32 %v2919_v9, %v1074_v18 }
 0x919   :  { %v1080_v23 = vadd.f32 %v2922_v15, %v1077_v19 }
 0x91b   :  { %v1081_v24 = vpack.c.bf16 %v1080_v23, %v1079_v22 }
 0x91d   :  { %2040 = vmatmul.msk.bf16.vlgmr.msrb.gmra.mxu0 %vm273_vm0, %v1081_v24 }
 0x99a   :  { %v1109_v39 = vpop.f32.mrf.mxu0 }
 0x99b   :  { %v1110_v27 = vadd.f32 %v2956_v53, %v1109_v39 }
 0x99d   :  { %v1114_v29 = vmax.f32 %v1110_v27, 0.0 }
 0x9a2   :  { %v1111_v37 = vpop.f32.mrf.mxu0 }
 0x9a3   :  { %v1112_v50 = vadd.f32 %v2956_v53, %v1111_v37 }
 0x9a5   :  { %v1115_v30 = vmax.f32 %v1112_v50, 0.0 }
 0x9a7   :  { %v1116_v44 = vpack.c.bf16 %v1115_v30, %v1114_v29 }
 0x9a9   :  { %2057 = vmatmul.msk.bf16.vlgmr.msra.gmra.mxu1 %vm1144_vm5, %v1116_v44 }
 0xa26   :  { %v1157_v46 = vpop.f32.mrf.mxu1 }
 0xa27   :  { %v1158_v48 = vadd.f32 %v2964_v45, %v1157_v46 }
 0xa29   :  { %v1162_v51 = vadd.f32 %v1158_v48, %v1079_v22 }
 0xa2b   :  { %v1164_v60 = vsel %vm273_vm0, %v1162_v51, 0.0 }
 0xa2c   :  { %1165 = vadd.xlane.f32.xlu2 %v1164_v60 }
 0xa2e   :  { %v1159_v61 = vpop.f32.mrf.mxu1 }
 0xa2f   :  { %v1160_v62 = vadd.f32 %v2964_v45, %v1159_v61 }
 0xa31   :  { %v1163_v63 = vadd.f32 %v1160_v62, %v1080_v23 }
 0xa33   :  { %v1167_v42 = vsel %vm273_vm0, %v1163_v63, 0.0 }
 0xa34   :  { %1168 = vadd.xlane.f32.xlu1 %v1167_v42 }
 0xa9f   :  { %v1166_v4 = vpop.xlane.xlu2 %1165 }
 0xaa0   :  { %v1170_v33 = vmul.f32 %v1166_v4, %v2789_v32 }
 0xaa2   :  { %v1172_v0 = vsub.f32 %v1162_v51, %v1170_v33  ;;  %v2977_v51 = vperm.slane %v2817_v10, 2 }
 0xaa4   :  { %v1174_v1 = vmul.f32 %v1172_v0, %v1172_v0 }
 0xaa6   :  { %v1176_v35 = vsel %vm273_vm0, %v1174_v1, 0.0 }
 0xaa7   :  { %v1169_v36 = vpop.xlane.xlu1 %1168  ;;  %1177 = vadd.xlane.f32.xlu0 %v1176_v35 }
 0xaa8   :  { %v1171_v5 = vmul.f32 %v1169_v36, %v2789_v32  ;;  %v2233_v36 = vld [vmem:[#allocation5] ss:$0 sm:$0xff] }
 0xaaa   :  { %v1173_v6 = vsub.f32 %v1163_v63, %v1171_v5  ;;  %v2980_v63 = vperm.slane %v2825_v21, 2 }
 0xaac   :  { %v1175_v7 = vmul.f32 %v1173_v6, %v1173_v6 }
 0xaae   :  { %v1179_v8 = vsel %vm273_vm0, %v1175_v7, 0.0 }
 0xaaf   :  { %1180 = vadd.xlane.f32.xlu2 %v1179_v8 }
 0xb1a   :  { %v1178_v11 = vpop.xlane.xlu0 %1177 }
 0xb1b   :  { %v1182_v12 = vmul.f32 %v1178_v11, %v2789_v32 }
 0xb1d   :  { %v1184_v14 = vadd.f32 1e-05, %v1182_v12 }
 0xb1f   :  { %2185 = vrsqrt.f32 %v1184_v14  ;;  %vm1192_vm7 = vweird.f32 %v1184_v14 }
 0xb22   :  { %v1181_v16 = vpop.xlane.xlu2 %1180 }
 0xb23   :  { %v1183_v18 = vmul.f32 %v1181_v16, %v2789_v32 }
 0xb25   :  { %v2186_v19 = vpop.eup %2185  ;;  %v1185_v22 = vadd.f32 1e-05, %v1183_v18 }
 0xb26   :  { %v1187_v23 = vmul.f32 %v2186_v19, %v1184_v14  ;;  %vm1193_vm6 = vweird.f32 %v2186_v19 }
 0xb27   :  { %2187 = vrsqrt.f32 %v1185_v22  ;;  %vm1194_vm8 = vmor %vm1192_vm7, %vm1193_vm6  ;;  %vm1202_vm10 = vweird.f32 %v1185_v22 }
 0xb28   :  { %v1188_v24 = vmul.f32 %v2186_v19, %v1187_v23 }
 0xb2a   :  { %v1189_v39 = vmul.f32 0.5, %v1188_v24 }
 0xb2c   :  { %v1190_v27 = vsub.f32 1.5, %v1189_v39 }
 0xb2d   :  { %v2188_v37 = vpop.eup %2187 }
 0xb2e   :  { %v1191_v50 = vmul.f32 %v2186_v19, %v1190_v27  ;;  %v1197_v29 = vmul.f32 %v2188_v37, %v1185_v22  ;;  %vm1203_vm9 = vweird.f32 %v2188_v37 }
 0xb2f   :  { %vm1204_vm11 = vmor %vm1202_vm10, %vm1203_vm9 }
 0xb30   :  { %v1198_v30 = vmul.f32 %v2188_v37, %v1197_v29  ;;  %v1195_v44 = vsel %vm1194_vm8, %v2186_v19, %v1191_v50 }
 0xb31   :  { %v1206_v60 = vmul.f32 %v1195_v44, %v1172_v0 }
 0xb32   :  { %v1199_v46 = vmul.f32 0.5, %v1198_v30 }
 0xb33   :  { %v1209_v42 = vmul.f32 %v2977_v51, %v1206_v60 }
 0xb34   :  { %v1200_v48 = vsub.f32 1.5, %v1199_v46 }
 0xb35   :  { %v2985_v1 = vadd.f32 %v2980_v63, %v1209_v42 }
 0xb36   :  { %v1201_v61 = vmul.f32 %v2188_v37, %v1200_v48 }
 0xb38   :  { %v1205_v62 = vsel %vm1204_vm11, %v2188_v37, %v1201_v61 }
 0xb39   :  { %v1207_v4 = vmul.f32 %v1205_v62, %v1173_v6 }
 0xb3b   :  { %v1210_v33 = vmul.f32 %v2977_v51, %v1207_v4 }
 0xb3d   :  { %v2988_v35 = vadd.f32 %v2980_v63, %v1210_v33 }
 0xb3f   :  { %v1214_v10 = vpack.c.bf16 %v2988_v35, %v2985_v1 }
 0xb41   :  { %2058 = vmatmul.msk.bf16.vlgmr.msra.gmra.mxu2 %vm273_vm0, %v1214_v10 }
 0xbc4   :  { %v1227_v0 = vpop.f32.mrf.mxu2 }
 0xbc5   :  { %v1228_v21 = vadd.f32 %v2233_v36, %v1227_v0 }
 0xbc7   :  { %v1240_v5 = vpack.c.bf16 %v1228_v21, %v1228_v21  ;;  %1234 = vrot.lane.b32.xlu0 %v1228_v21, %s2527_s4 }
 0xbc9   :  { %v1245_v6 = vunpack.c.l.b16 %v1240_v5 }
 0xbcb   :  { %v1246_v11 = vpack.c.b16 %v1245_v6, %v1245_v6 }
 0xbcc   :  { %v1229_v7 = vpop.f32.mrf.mxu2 }
 0xbcd   :  { %v1230_v8 = vadd.f32 %v2233_v36, %v1229_v7 }
 0xbcf   :  { %1236 = vrot.lane.b32.xlu1 %v1230_v8, %s2527_s4  ;;  %1247 = vrot.lane.b32.xlu0 %v1246_v11, %s2526_s26  ;;  %v1241_v27 = vpack.c.bf16 %v1230_v8, %v1230_v8 }
 0xbd1   :  { %v1269_v50 = vunpack.c.l.b16 %v1241_v27 }
 0xbd3   :  { %v1270_v29 = vpack.c.b16 %v1269_v50, %v1269_v50 }
 0xc39   :  { %v1235_v12 = vpop.permute.xlu0 %1234 }
 0xc3a   :  { %v1242_v14 = vpack.c.bf16 %v1235_v12, %v1235_v12 }
 0xc3c   :  { %v1293_v16 = vunpack.c.l.b16 %v1242_v14 }
 0xc3e   :  { %v1294_v18 = vpack.c.b16 %v1293_v16, %v1293_v16 }
 0xc40   :  { %1295 = vrot.lane.b32.xlu1 %v1294_v18, %s2526_s26 }
 0xc41   :  { %v1237_v19 = vpop.permute.xlu1 %1236  ;;  %v1248_v22 = vpop.permute.xlu0 %1247 }
 0xc42   :  { %v1243_v23 = vpack.c.bf16 %v1237_v19, %v1237_v19  ;;  %v1253_v24 = vsel %vm349_vm1, %v1248_v22, 0 }
 0xc43   :  { %1262 = vmatpush.bf16.xpose.msra.mxu3 %v1253_v24 }
 0xc44   :  { %v1317_v39 = vunpack.c.l.b16 %v1243_v23 }
 0xc46   :  { %v1318_v37 = vpack.c.b16 %v1317_v39, %v1317_v39 }
 0xc48   :  { %1319 = vrot.lane.b32.xlu2 %v1318_v37, %s2526_s26  ;;  %1443 = vrot.lane.b32.xlu0 %v1318_v37, %s2519_s2 }
 0xc4a   :  { %2059 = vmatmul.msk.bf16.vlgmr.msra.gmra.mxu3 %vm349_vm1, %v1240_v5 }
 0xc50   :  { %1271 = vrot.lane.b32.xlu2 %v1270_v29, %s2526_s26 }
 0xca2   :  { %v1320_v30 = vpop.permute.xlu2 %1319 }
 0xca3   :  { %v1325_v44 = vsel %vm349_vm1, %v1320_v30, 0 }
 0xca4   :  { %1334 = vmatpush.bf16.xpose.msrb.mxu2 %v1325_v44 }
 0xcaa   :  { %v1272_v46 = vpop.permute.xlu2 %1271 }
 0xcab   :  { %v1277_v48 = vsel %vm349_vm1, %v1272_v46, 0  ;;  %2062 = vmatmul.msk.bf16.vlgmr.msrb.gmra.mxu2 %vm349_vm1, %v1243_v23 }
 0xcac   :  { %1286 = vmatpush.bf16.xpose.msra.mxu0 %v1277_v48 }
 0xcb2   :  { %v1296_v60 = vpop.permute.xlu1 %1295 }
 0xcb3   :  { %v1301_v61 = vsel %vm349_vm1, %v1296_v60, 0  ;;  %2060 = vmatmul.msk.bf16.vlgmr.msra.gmra.mxu0 %vm349_vm1, %v1241_v27 }
 0xcb4   :  { %1310 = vmatpush.bf16.xpose.msrb.mxu1 %v1301_v61 }
 0xcba   :  { %v1444_v62 = vpop.permute.xlu0 %1443 }
 0xcbb   :  { %v1449_v42 = vsel %vm487_vm2, %v1444_v62, 0  ;;  %2061 = vmatmul.msk.bf16.vlgmr.msrb.gmra.mxu1 %vm349_vm1, %v1242_v14 }
 0xcbc   :  { %1458 = vmatpush.bf16.msra.mxu2 %v1449_v42 }
 0xcc0   :  { %1600 = vmatpush.bf16.xpose.msrb.mxu2 %v2762_v43 }
 0xccd   :  { %v1264_v4 = vpop.f32.mrf.mxu3 }
 0xcce   :  { %v1340_v33 = vsel %vm441_vm3, %v1264_v4, -inf }
 0xccf   :  { %1341 = vmax.xlane.f32.xlu1 %v1340_v33 }
 0xcd5   :  { %v1266_v10 = vpop.f32.mrf.mxu3 }
 0xce8   :  { %1380 = vrot.lane.b32.xlu1 %v1246_v11, %s2519_s2 }
 0xd2e   :  { %v1336_v0 = vpop.f32.mrf.mxu2 }
 0xd2f   :  { %v1349_v36 = vsel %vm441_vm3, %v1336_v0, -inf }
 0xd30   :  { %v1288_v21 = vpop.f32.mrf.mxu0  ;;  %1350 = vmax.xlane.f32.xlu0 %v1349_v36 }
 0xd31   :  { %v1343_v5 = vsel %vm441_vm3, %v1288_v21, -inf }
 0xd32   :  { %1344 = vmax.xlane.f32.xlu2 %v1343_v5  ;;  %v2234_v5 = vld [vmem:[#allocation7] sm:$0xff] }
 0xd36   :  { %v1338_v6 = vpop.f32.mrf.mxu2 }
 0xd38   :  { %v1290_v7 = vpop.f32.mrf.mxu0  ;;  %v1312_v8 = vpop.f32.mrf.mxu1 }
 0xd39   :  { %v1346_v43 = vsel %vm441_vm3, %v1312_v8, -inf }
 0xd3a   :  { %1347 = vmax.xlane.f32.xlu2 %v1346_v43 }
 0xd40   :  { %v1314_v12 = vpop.f32.mrf.mxu1 }
 0xd42   :  { %v1342_v14 = vpop.xlane.xlu1 %1341 }
 0xd43   :  { %v1352_v16 = vsub.f32 %v1264_v4, %v1342_v14 }
 0xd44   :  { %1401 = vrot.lane.b32.xlu0 %v1270_v29, %s2519_s2 }
 0xd45   :  { %v1356_v11 = vmul.f32 1.442695, %v1352_v16 }
 0xd47   :  { %2189 = vpow2.f32 %v1356_v11 }
 0xd4d   :  { %v2190_v19 = vpop.eup %2189 }
 0xd4e   :  { %v1376_v24 = vpack.c.bf16 %v2190_v19, %v2190_v19  ;;  %v1364_v39 = vsel %vm441_vm3, %v2190_v19, 0.0 }
 0xd52   :  { %1422 = vrot.lane.b32.xlu2 %v1294_v18, %s2519_s2 }
 0xd5a   :  { %v1381_v22 = vpop.permute.xlu1 %1380 }
 0xd5b   :  { %v1386_v23 = vsel %vm487_vm2, %v1381_v22, 0 }
 0xd5c   :  { %1395 = vmatpush.bf16.msrb.mxu3 %v1386_v23 }
 0xd5f   :  { %2063 = vmatmul.msk.bf16.vlgmr.msrb.gmra.mxu3 %vm441_vm3, %v1376_v24 }
 0xd60   :  { %1484 = vmatpush.bf16.msra.mxu3 %v2771_v52 }
 0xd64   :  { %1616 = vmatpush.bf16.xpose.msrb.mxu3 %v2776_v54 }
 0xd7b   :  { %1365 = vadd.xlane.f32.xlu2 %v1364_v39 }
 0xda3   :  { %v1351_v27 = vpop.xlane.xlu0 %1350 }
 0xda4   :  { %v1355_v37 = vsub.f32 %v1336_v0, %v1351_v27 }
 0xda5   :  { %v1345_v50 = vpop.xlane.xlu2 %1344 }
 0xda6   :  { %v1362_v18 = vmul.f32 1.442695, %v1355_v37  ;;  %v1353_v29 = vsub.f32 %v1288_v21, %v1345_v50 }
 0xda8   :  { %2191 = vpow2.f32 %v1362_v18  ;;  %v1358_v30 = vmul.f32 1.442695, %v1353_v29 }
 0xdaa   :  { %2193 = vpow2.f32 %v1358_v30 }
 0xdad   :  { %v1348_v44 = vpop.xlane.xlu2 %1347 }
 0xdae   :  { %v2192_v46 = vpop.eup %2191  ;;  %v1354_v48 = vsub.f32 %v1312_v8, %v1348_v44 }
 0xdaf   :  { %v1379_v60 = vpack.c.bf16 %v2192_v46, %v2192_v46  ;;  %v1373_v52 = vsel %vm441_vm3, %v2192_v46, 0.0 }
 0xdb0   :  { %v1360_v61 = vmul.f32 1.442695, %v1354_v48  ;;  %1374 = vadd.xlane.f32.xlu1 %v1373_v52  ;;  %v2194_v62 = vpop.eup %2193  ;;  %v2235_v48 = vld [vmem:[#allocation8] ss:$0 sm:$0xff] }
 0xdb1   :  { %2066 = vmatmul.msk.bf16.vlgmr.msra.gmra.mxu2 %vm441_vm3, %v1379_v60  ;;  %v1377_v0 = vpack.c.bf16 %v2194_v62, %v2194_v62 }
 0xdb2   :  { %2195 = vpow2.f32 %v1360_v61  ;;  %1704 = vmatpush.bf16.msra.mxu2 %v2856_v59  ;;  %v1367_v59 = vsel %vm441_vm3, %v2194_v62, 0.0 }
 0xdb5   :  { %v1423_v54 = vpop.permute.xlu2 %1422 }
 0xdb6   :  { %v1428_v42 = vsel %vm487_vm2, %v1423_v54, 0  ;;  %v1402_v4 = vpop.permute.xlu0 %1401 }
 0xdb7   :  { %v1407_v33 = vsel %vm487_vm2, %v1402_v4, 0  ;;  %1437 = vmatpush.bf16.msra.mxu1 %v1428_v42 }
 0xdb8   :  { %v2196_v10 = vpop.eup %2195  ;;  %1416 = vmatpush.bf16.msrb.mxu0 %v1407_v33 }
 0xdb9   :  { %v1378_v36 = vpack.c.bf16 %v2196_v10, %v2196_v10  ;;  %v1370_v21 = vsel %vm441_vm3, %v2196_v10, 0.0 }
 0xdba   :  { %1371 = vadd.xlane.f32.xlu0 %v1370_v21 }
 0xdbb   :  { %1570 = vmatpush.bf16.msrb.mxu1 %v2806_v56  ;;  %2064 = vmatmul.msk.bf16.vlgmr.msrb.gmra.mxu0 %vm441_vm3, %v1377_v0 }
 0xdbc   :  { %1501 = vmatpush.bf16.msra.mxu0 %v2234_v5  ;;  %2065 = vmatmul.msk.bf16.vlgmr.msra.gmra.mxu1 %vm441_vm3, %v1378_v36 }
 0xdbf   :  { %1571 = vmatpush.bf16.msrb.mxu1 %v2809_v57 }
 0xdc0   :  { %1632 = vmatpush.bf16.xpose.msrb.mxu0 %v2799_v55 }
 0xdc2   :  { %1368 = vadd.xlane.f32.xlu0 %v1367_v59 }
 0xdc3   :  { %1648 = vmatpush.bf16.xpose.msra.mxu1 %v2833_v3 }
 0xde2   :  { %v1397_v56 = vpop.f32.mrf.mxu3 }
 0xdea   :  { %v1399_v6 = vpop.f32.mrf.mxu3 }
 0xdee   :  { %v1366_v43 = vpop.xlane.xlu2 %1365 }
 0xe23   :  { %v1375_v8 = vpop.xlane.xlu1 %1374 }
 0xe24   :  { %2197 = vrcp.f32 %v1375_v8 }
 0xe2a   :  { %v2198_v16 = vpop.eup %2197 }
 0xe2d   :  { %v1372_v7 = vpop.xlane.xlu0 %1371 }
 0xe2e   :  { %2199 = vrcp.f32 %v1372_v7 }
 0xe2f   :  { %2201 = vrcp.f32 %v1366_v43 }
 0xe34   :  { %v1460_v12 = vpop.f32.mrf.mxu2  ;;  %v2200_v57 = vpop.eup %2199 }
 0xe35   :  { %v1369_v14 = vpop.xlane.xlu0 %1368  ;;  %v1471_v19 = vmul.f32 %v2198_v16, %v1460_v12  ;;  %v2202_v22 = vpop.eup %2201 }
 0xe36   :  { %2203 = vrcp.f32 %v1369_v14  ;;  %v1468_v27 = vmul.f32 %v2202_v22, %v1397_v56 }
 0xe38   :  { %v1418_v11 = vpop.f32.mrf.mxu0 }
 0xe39   :  { %v1439_v55 = vpop.f32.mrf.mxu1 }
 0xe3a   :  { %v1470_v3 = vmul.f32 %v2200_v57, %v1439_v55 }
 0xe3c   :  { %v1473_v23 = vpack.c.bf16 %v1471_v19, %v1470_v3  ;;  %v2204_v24 = vpop.eup %2203  ;;  %v1462_v39 = vpop.f32.mrf.mxu2 }
 0xe3d   :  { %v1469_v37 = vmul.f32 %v2204_v24, %v1418_v11 }
 0xe3e   :  { %2067 = vmatmul.msk.bf16.vlgmr.msra.gmra.mxu3 %vm349_vm1, %v1473_v23 }
 0xe3f   :  { %1720 = vmatpush.bf16.msra.mxu3 %v2881_v41  ;;  %v1472_v50 = vpack.c.bf16 %v1469_v37, %v1468_v27 }
 0xe40   :  { %v1420_v18 = vpop.f32.mrf.mxu0 }
 0xe41   :  { %v1441_v29 = vpop.f32.mrf.mxu1  ;;  %2068 = vmatmul.msk.bf16.vlgmr.msra.gmra.mxu0 %vm349_vm1, %v1472_v50 }
 0xe42   :  { %1736 = vmatpush.bf16.msra.mxu0 %v2874_v34 }
 0xebe   :  { %v1503_v30 = vpop.f32.mrf.mxu0 }
 0xec1   :  { %v1486_v44 = vpop.f32.mrf.mxu3 }
 0xec2   :  { %v1504_v46 = vadd.f32 %v1503_v30, %v1486_v44 }
 0xec4   :  { %v1508_v60 = vadd.f32 %v2235_v48, %v1504_v46 }
 0xec6   :  { %v1510_v52 = vadd.f32 %v1508_v60, %v2985_v1  ;;  %v1505_v54 = vpop.f32.mrf.mxu0 }
 0xec8   :  { %v1512_v61 = vsel %vm273_vm0, %v1510_v52, 0.0 }
 0xec9   :  { %v1488_v62 = vpop.f32.mrf.mxu3  ;;  %1513 = vadd.xlane.f32.xlu1 %v1512_v61 }
 0xeca   :  { %v1506_v41 = vadd.f32 %v1505_v54, %v1488_v62 }
 0xecc   :  { %v1509_v42 = vadd.f32 %v2235_v48, %v1506_v41 }
 0xece   :  { %v1511_v4 = vadd.f32 %v1509_v42, %v2988_v35 }
 0xed0   :  { %v1515_v33 = vsel %vm273_vm0, %v1511_v4, 0.0 }
 0xed1   :  { %1516 = vadd.xlane.f32.xlu2 %v1515_v33 }
 0xf3c   :  { %v1514_v34 = vpop.xlane.xlu1 %1513 }
 0xf3d   :  { %v1518_v10 = vmul.f32 %v1514_v34, %v2789_v32 }
 0xf3f   :  { %v1520_v0 = vsub.f32 %v1510_v52, %v1518_v10 }
 0xf41   :  { %v1522_v36 = vmul.f32 %v1520_v0, %v1520_v0 }
 0xf43   :  { %v1524_v21 = vsel %vm273_vm0, %v1522_v36, 0.0 }
 0xf44   :  { %v1517_v1 = vpop.xlane.xlu2 %1516  ;;  %1525 = vadd.xlane.f32.xlu0 %v1524_v21 }
 0xf45   :  { %v1519_v5 = vmul.f32 %v1517_v1, %v2789_v32 }
 0xf47   :  { %v1521_v59 = vsub.f32 %v1511_v4, %v1519_v5 }
 0xf49   :  { %v1523_v56 = vmul.f32 %v1521_v59, %v1521_v59 }
 0xf4b   :  { %v1527_v6 = vsel %vm273_vm0, %v1523_v56, 0.0 }
 0xf4c   :  { %1528 = vadd.xlane.f32.xlu1 %v1527_v6 }
 0xfb7   :  { %v1526_v35 = vpop.xlane.xlu0 %1525 }
 0xfb8   :  { %v1530_v7 = vmul.f32 %v1526_v35, %v2789_v32 }
 0xfba   :  { %v1532_v8 = vadd.f32 1e-05, %v1530_v7 }
 0xfbc   :  { %2205 = vrsqrt.f32 %v1532_v8  ;;  %vm1540_vm3 = vweird.f32 %v1532_v8 }
 0xfbf   :  { %v1529_v43 = vpop.xlane.xlu1 %1528 }
 0xfc0   :  { %v1531_v12 = vmul.f32 %v1529_v43, %v2789_v32 }
 0xfc2   :  { %v2206_v14 = vpop.eup %2205  ;;  %v1533_v16 = vadd.f32 1e-05, %v1531_v12 }
 0xfc3   :  { %v1535_v57 = vmul.f32 %v2206_v14, %v1532_v8  ;;  %vm1541_vm2 = vweird.f32 %v2206_v14 }
 0xfc4   :  { %2207 = vrsqrt.f32 %v1533_v16  ;;  %vm1542_vm12 = vmor %vm1540_vm3, %vm1541_vm2  ;;  %vm1550_vm14 = vweird.f32 %v1533_v16 }
 0xfc5   :  { %v1536_v11 = vmul.f32 %v2206_v14, %v1535_v57 }
 0xfc7   :  { %v1537_v55 = vmul.f32 0.5, %v1536_v11 }
 0xfc9   :  { %v1538_v19 = vsub.f32 1.5, %v1537_v55 }
 0xfca   :  { %v2208_v3 = vpop.eup %2207 }
 0xfcb   :  { %v1539_v22 = vmul.f32 %v2206_v14, %v1538_v19  ;;  %v1545_v23 = vmul.f32 %v2208_v3, %v1533_v16  ;;  %vm1551_vm13 = vweird.f32 %v2208_v3 }
 0xfcc   :  { %vm1552_vm15 = vmor %vm1550_vm14, %vm1551_vm13 }
 0xfcd   :  { %v1546_v24 = vmul.f32 %v2208_v3, %v1545_v23  ;;  %v1543_v39 = vsel %vm1542_vm12, %v2206_v14, %v1539_v22 }
 0xfce   :  { %v1554_v50 = vmul.f32 %v1543_v39, %v1520_v0 }
 0xfcf   :  { %v1547_v27 = vmul.f32 0.5, %v1546_v24 }
 0xfd0   :  { %v1556_v30 = vmul.f32 %v1554_v50, %v2820_v17 }
 0xfd1   :  { %v1548_v37 = vsub.f32 1.5, %v1547_v27 }
 0xfd2   :  { %v3052_v48 = vadd.f32 %v1556_v30, %v2828_v25 }
 0xfd3   :  { %v1549_v18 = vmul.f32 %v2208_v3, %v1548_v37 }
 0xfd5   :  { %v1553_v29 = vsel %vm1552_vm15, %v2208_v3, %v1549_v18 }
 0xfd6   :  { %v1555_v44 = vmul.f32 %v1553_v29, %v1521_v59 }
 0xfd8   :  { %v1557_v46 = vmul.f32 %v1555_v44, %v2820_v17 }
 0xfda   :  { %v3055_v60 = vadd.f32 %v1557_v46, %v2828_v25 }
 0xfdc   :  { %v1560_v52 = vpack.c.bf16 %v3055_v60, %v3052_v48 }
 0xfde   :  { %2069 = vmatmul.msk.bf16.vlgmr.msrb.gmra.mxu1 %vm273_vm0, %v1560_v52 }
 0xfdf   :  { %1752 = vmatpush.bf16.msrb.mxu1 %v2866_v20 }
0x105b   :  { %v1573_v61 = vpop.f32.mrf.mxu1 }
0x105c   :  { %v1574_v54 = vadd.f32 %v2845_v40, %v1573_v61 }
0x105e   :  { %v1586_v62 = vpack.c.bf16 %v1574_v54, %v1574_v54 }
0x1060   :  { %2070 = vmatmul.msk.bf16.vlgmr.msrb.gmra.mxu2 %vm349_vm1, %v1586_v62 }
0x1061   :  { %1778 = vmatpush.bf16.msrb.mxu2 %v2885_v47 }
0x1063   :  { %v1575_v17 = vpop.f32.mrf.mxu1 }
0x1064   :  { %v1576_v41 = vadd.f32 %v2845_v40, %v1575_v17 }
0x1066   :  { %v1587_v25 = vpack.c.bf16 %v1576_v41, %v1576_v41  ;;  %v2131_v42 = vpack.i.bf16 %v1576_v41, %v1574_v54 }
0x1068   :  { %2071 = vmatmul.msk.bf16.vlgmr.msrb.gmra.mxu3 %vm349_vm1, %v1587_v25  ;;  %2132 = vrot.lane.b32.xlu2 %v2131_v42, %s2527_s4  ;;  %s1950_s4 = sshll.u32 %s3147_s18, 4  ;;  %s1951_s4 = int_to_ptr.hbm [resolvable:$true] %s1950_s4 }
0x1069   :  { %1795 = vmatpush.bf16.msrb.mxu3 %v2890_v49 }
0x10c2   :  { %v2133_v20 = vpop.permute.xlu2 %2132 }
0x10c3   :  { %v2135_v4 = vunpack.i.h.bf16 %v2133_v20  ;;  %v2134_v33 = vunpack.i.l.bf16 %v2133_v20 }
0x10c5   :  { %v1589_v34 = vpack.c.bf16 %v2135_v4, %v2135_v4  ;;  %v1588_v10 = vpack.c.bf16 %v2134_v33, %v2134_v33 }
0x10c7   :  { %2072 = vmatmul.msk.bf16.vlgmr.msrb.gmra.mxu0 %vm349_vm1, %v1588_v10  ;;  %2073 = vmatmul.msk.bf16.vlgmr.msra.gmra.mxu1 %vm349_vm1, %v1589_v34 }
0x10c8   :  { %1864 = vmatpush.bf16.msrb.mxu0 %v2910_v38  ;;  %1882 = vmatpush.bf16.msra.mxu1 %v2932_v2 }
0x10cc   :  { %1865 = vmatpush.bf16.msrb.mxu0 %v2914_v58  ;;  %1883 = vmatpush.bf16.msra.mxu1 %v2938_v26 }
0x10d0   :  { %1884 = vmatpush.bf16.msra.mxu1 %v2944_v28 }
0x10d4   :  { %1885 = vmatpush.bf16.msra.mxu1 %v2950_v31 }
0x10e3   :  { %v1602_v40 = vpop.f32.mrf.mxu2 }
0x10e4   :  { %v1654_v47 = vsel %vm349_vm1, %v1602_v40, -inf }
0x10e5   :  { %1655 = vmax.xlane.f32.xlu0 %v1654_v47 }
0x10eb   :  { %v1604_v49 = vpop.f32.mrf.mxu2  ;;  %v1618_v0 = vpop.f32.mrf.mxu3 }
0x10ec   :  { %v1657_v36 = vsel %vm349_vm1, %v1618_v0, -inf }
0x10ed   :  { %1658 = vmax.xlane.f32.xlu1 %v1657_v36 }
0x10f3   :  { %v1620_v38 = vpop.f32.mrf.mxu3 }
0x1144   :  { %v1634_v21 = vpop.f32.mrf.mxu0  ;;  %v1650_v2 = vpop.f32.mrf.mxu1 }
0x1145   :  { %v1663_v58 = vsel %vm349_vm1, %v1650_v2, -inf  ;;  %v1660_v26 = vsel %vm349_vm1, %v1634_v21, -inf }
0x1146   :  { %1664 = vmax.xlane.f32.xlu1 %v1663_v58  ;;  %1661 = vmax.xlane.f32.xlu0 %v1660_v26 }
0x114c   :  { %v1636_v28 = vpop.f32.mrf.mxu0  ;;  %v1652_v31 = vpop.f32.mrf.mxu1 }
0x1158   :  { %v1656_v1 = vpop.xlane.xlu0 %1655 }
0x1159   :  { %v1666_v5 = vsub.f32 %v1602_v40, %v1656_v1 }
0x115b   :  { %v1670_v59 = vmul.f32 1.442695, %v1666_v5 }
0x115d   :  { %2209 = vpow2.f32 %v1670_v59 }
0x1160   :  { %v1659_v56 = vpop.xlane.xlu1 %1658 }
0x1161   :  { %v1667_v6 = vsub.f32 %v1618_v0, %v1659_v56 }
0x1163   :  { %v2210_v35 = vpop.eup %2209  ;;  %v1672_v7 = vmul.f32 1.442695, %v1667_v6 }
0x1164   :  { %v1690_v8 = vpack.c.bf16 %v2210_v35, %v2210_v35  ;;  %v1678_v43 = vsel %vm349_vm1, %v2210_v35, 0.0 }
0x1165   :  { %2211 = vpow2.f32 %v1672_v7  ;;  %1679 = vadd.xlane.f32.xlu0 %v1678_v43 }
0x1166   :  { %2074 = vmatmul.msk.bf16.vlgmr.msra.gmra.mxu2 %vm349_vm1, %v1690_v8 }
0x116b   :  { %v2212_v12 = vpop.eup %2211 }
0x116c   :  { %v1691_v14 = vpack.c.bf16 %v2212_v12, %v2212_v12  ;;  %v1681_v16 = vsel %vm349_vm1, %v2212_v12, 0.0 }
0x116d   :  { %1682 = vadd.xlane.f32.xlu1 %v1681_v16 }
0x116e   :  { %2075 = vmatmul.msk.bf16.vlgmr.msra.gmra.mxu3 %vm349_vm1, %v1691_v14 }
0x11b9   :  { %v1665_v57 = vpop.xlane.xlu1 %1664  ;;  %v1662_v11 = vpop.xlane.xlu0 %1661 }
0x11ba   :  { %v1669_v55 = vsub.f32 %v1650_v2, %v1665_v57  ;;  %v1668_v19 = vsub.f32 %v1634_v21, %v1662_v11 }
0x11bc   :  { %v1676_v3 = vmul.f32 1.442695, %v1669_v55  ;;  %v1674_v22 = vmul.f32 1.442695, %v1668_v19 }
0x11be   :  { %2213 = vpow2.f32 %v1676_v3 }
0x11bf   :  { %2215 = vpow2.f32 %v1674_v22 }
0x11c4   :  { %v2214_v23 = vpop.eup %2213 }
0x11c5   :  { %v2216_v24 = vpop.eup %2215  ;;  %v1693_v39 = vpack.c.bf16 %v2214_v23, %v2214_v23  ;;  %v1687_v27 = vsel %vm349_vm1, %v2214_v23, 0.0 }
0x11c6   :  { %v1692_v37 = vpack.c.bf16 %v2216_v24, %v2216_v24  ;;  %1688 = vadd.xlane.f32.xlu0 %v1687_v27  ;;  %v1684_v50 = vsel %vm349_vm1, %v2216_v24, 0.0 }
0x11c7   :  { %1685 = vadd.xlane.f32.xlu2 %v1684_v50  ;;  %2077 = vmatmul.msk.bf16.vlgmr.msrb.gmra.mxu1 %vm349_vm1, %v1693_v39 }
0x11c8   :  { %2076 = vmatmul.msk.bf16.vlgmr.msra.gmra.mxu0 %vm349_vm1, %v1692_v37 }
0x11d8   :  { %v1680_v18 = vpop.xlane.xlu0 %1679 }
0x11d9   :  { %2217 = vrcp.f32 %v1680_v18 }
0x11df   :  { %v2218_v44 = vpop.eup %2217 }
0x11e0   :  { %v1683_v29 = vpop.xlane.xlu1 %1682 }
0x11e1   :  { %2219 = vrcp.f32 %v1683_v29 }
0x11e7   :  { %v2220_v46 = vpop.eup %2219 }
0x11e9   :  { %v1706_v30 = vpop.f32.mrf.mxu2 }
0x11ea   :  { %v1762_v54 = vmul.f32 %v2218_v44, %v1706_v30 }
0x11f1   :  { %v1708_v52 = vpop.f32.mrf.mxu2  ;;  %v1722_v61 = vpop.f32.mrf.mxu3 }
0x11f2   :  { %v1763_v62 = vmul.f32 %v2220_v46, %v1722_v61 }
0x11f4   :  { %v1766_v17 = vpack.c.bf16 %v1763_v62, %v1762_v54 }
0x11f6   :  { %2079 = vmatmul.msk.bf16.vlgmr.msrb.gmra.mxu3 %vm349_vm1, %v1766_v17 }
0x11f9   :  { %v1724_v41 = vpop.f32.mrf.mxu3 }
0x1239   :  { %v1689_v25 = vpop.xlane.xlu0 %1688 }
0x123a   :  { %v1686_v42 = vpop.xlane.xlu2 %1685  ;;  %2221 = vrcp.f32 %v1689_v25 }
0x123b   :  { %2223 = vrcp.f32 %v1686_v42 }
0x1240   :  { %v2222_v20 = vpop.eup %2221 }
0x1241   :  { %v2224_v33 = vpop.eup %2223 }
0x1244   :  { %v1754_v4 = vpop.f32.mrf.mxu1 }
0x1245   :  { %v1738_v34 = vpop.f32.mrf.mxu0  ;;  %v1765_v10 = vmul.f32 %v2222_v20, %v1754_v4 }
0x1246   :  { %v1764_v40 = vmul.f32 %v2224_v33, %v1738_v34 }
0x1248   :  { %v1767_v47 = vpack.c.bf16 %v1765_v10, %v1764_v40 }
0x124a   :  { %2078 = vmatmul.msk.bf16.vlgmr.msrb.gmra.mxu2 %vm349_vm1, %v1767_v47 }
0x124c   :  { %v1756_v49 = vpop.f32.mrf.mxu1 }
0x124d   :  { %v1740_v0 = vpop.f32.mrf.mxu0 }
0x1279   :  { %v1797_v36 = vpop.f32.mrf.mxu3 }
0x1281   :  { %v1799_v28 = vpop.f32.mrf.mxu3 }
0x12cd   :  { %v1780_v38 = vpop.f32.mrf.mxu2 }
0x12ce   :  { %v1798_v21 = vadd.f32 %v1797_v36, %v1780_v38 }
0x12d0   :  { %v1802_v2 = vadd.f32 %v2898_v13, %v1798_v21 }
0x12d2   :  { %v1804_v58 = vadd.f32 %v1802_v2, %v3052_v48 }
0x12d4   :  { %v1806_v26 = vsel %vm273_vm0, %v1804_v58, 0.0 }
0x12d5   :  { %1807 = vadd.xlane.f32.xlu1 %v1806_v26  ;;  %v1782_v31 = vpop.f32.mrf.mxu2 }
0x12d6   :  { %v1800_v1 = vadd.f32 %v1799_v28, %v1782_v31 }
0x12d8   :  { %v1803_v5 = vadd.f32 %v2898_v13, %v1800_v1 }
0x12da   :  { %v1805_v59 = vadd.f32 %v1803_v5, %v3055_v60 }
0x12dc   :  { %v1809_v56 = vsel %vm273_vm0, %v1805_v59, 0.0 }
0x12dd   :  { %1810 = vadd.xlane.f32.xlu0 %v1809_v56 }
0x1348   :  { %v1808_v6 = vpop.xlane.xlu1 %1807 }
0x1349   :  { %v1812_v35 = vmul.f32 %v1808_v6, %v2789_v32 }
0x134b   :  { %v1814_v7 = vsub.f32 %v1804_v58, %v1812_v35 }
0x134d   :  { %v1816_v8 = vmul.f32 %v1814_v7, %v1814_v7 }
0x134f   :  { %v1818_v48 = vsel %vm273_vm0, %v1816_v8, 0.0 }
0x1350   :  { %1819 = vadd.xlane.f32.xlu1 %v1818_v48  ;;  %v1811_v43 = vpop.xlane.xlu0 %1810 }
0x1351   :  { %v1813_v12 = vmul.f32 %v1811_v43, %v2789_v32 }
0x1353   :  { %v1815_v14 = vsub.f32 %v1805_v59, %v1813_v12 }
0x1355   :  { %v1817_v16 = vmul.f32 %v1815_v14, %v1815_v14 }
0x1357   :  { %v1821_v13 = vsel %vm273_vm0, %v1817_v16, 0.0 }
0x1358   :  { %1822 = vadd.xlane.f32.xlu0 %v1821_v13 }
0x13c3   :  { %v1820_v60 = vpop.xlane.xlu1 %1819 }
0x13c4   :  { %v1824_v57 = vmul.f32 %v1820_v60, %v2789_v32 }
0x13c6   :  { %v1826_v11 = vadd.f32 1e-05, %v1824_v57 }
0x13c8   :  { %2225 = vrsqrt.f32 %v1826_v11  ;;  %vm1834_vm4 = vweird.f32 %v1826_v11 }
0x13cb   :  { %v1823_v55 = vpop.xlane.xlu0 %1822 }
0x13cc   :  { %v1825_v19 = vmul.f32 %v1823_v55, %v2789_v32 }
0x13ce   :  { %v2226_v3 = vpop.eup %2225  ;;  %v1827_v22 = vadd.f32 1e-05, %v1825_v19 }
0x13cf   :  { %v1829_v23 = vmul.f32 %v2226_v3, %v1826_v11  ;;  %vm1835_vm1 = vweird.f32 %v2226_v3 }
0x13d0   :  { %2227 = vrsqrt.f32 %v1827_v22  ;;  %vm1836_vm6 = vmor %vm1834_vm4, %vm1835_vm1  ;;  %vm1844_vm8 = vweird.f32 %v1827_v22 }
0x13d1   :  { %v1830_v24 = vmul.f32 %v2226_v3, %v1829_v23 }
0x13d3   :  { %v1831_v39 = vmul.f32 0.5, %v1830_v24 }
0x13d5   :  { %v1832_v27 = vsub.f32 1.5, %v1831_v39 }
0x13d6   :  { %v2228_v37 = vpop.eup %2227 }
0x13d7   :  { %v1833_v50 = vmul.f32 %v2226_v3, %v1832_v27  ;;  %v1839_v18 = vmul.f32 %v2228_v37, %v1827_v22  ;;  %vm1845_vm7 = vweird.f32 %v2228_v37 }
0x13d8   :  { %vm1846_vm9 = vmor %vm1844_vm8, %vm1845_vm7 }
0x13d9   :  { %v1840_v29 = vmul.f32 %v2228_v37, %v1839_v18  ;;  %v1837_v30 = vsel %vm1836_vm6, %v2226_v3, %v1833_v50 }
0x13da   :  { %v1848_v52 = vmul.f32 %v1837_v30, %v1814_v7 }
0x13db   :  { %v1841_v44 = vmul.f32 0.5, %v1840_v29 }
0x13dc   :  { %v1850_v62 = vmul.f32 %v1848_v52, %v2919_v9 }
0x13dd   :  { %v1842_v46 = vsub.f32 1.5, %v1841_v44 }
0x13de   :  { %v1852_v25 = vadd.f32 %v1850_v62, %v2922_v15 }
0x13df   :  { %v1843_v61 = vmul.f32 %v2228_v37, %v1842_v46 }
0x13e1   :  { %v1847_v54 = vsel %vm1846_vm9, %v2228_v37, %v1843_v61 }
0x13e2   :  { %v1849_v17 = vmul.f32 %v1847_v54, %v1815_v14 }
0x13e4   :  { %v1851_v41 = vmul.f32 %v1849_v17, %v2919_v9 }
0x13e6   :  { %v1853_v42 = vadd.f32 %v1851_v41, %v2922_v15 }
0x13e8   :  { %v1854_v20 = vpack.c.bf16 %v1853_v42, %v1852_v25 }
0x13ea   :  { %2080 = vmatmul.msk.bf16.vlgmr.msrb.gmra.mxu0 %vm273_vm0, %v1854_v20 }
0x1467   :  { %v1867_v4 = vpop.f32.mrf.mxu0 }
0x1468   :  { %v1868_v33 = vadd.f32 %v2956_v53, %v1867_v4 }
0x146a   :  { %v1872_v40 = vmax.f32 %v1868_v33, 0.0 }
0x146f   :  { %v1869_v34 = vpop.f32.mrf.mxu0 }
0x1470   :  { %v1870_v10 = vadd.f32 %v2956_v53, %v1869_v34 }
0x1472   :  { %v1873_v47 = vmax.f32 %v1870_v10, 0.0 }
0x1474   :  { %v1874_v49 = vpack.c.bf16 %v1873_v47, %v1872_v40 }
0x1476   :  { %2081 = vmatmul.msk.bf16.vlgmr.msra.gmra.mxu1 %vm1144_vm5, %v1874_v49 }
0x14f3   :  { %v1887_v0 = vpop.f32.mrf.mxu1 }
0x14f4   :  { %v1888_v9 = vadd.f32 %v2964_v45, %v1887_v0 }
0x14f6   :  { %v1892_v36 = vadd.f32 %v1888_v9, %v1852_v25 }
0x14f8   :  { %v1894_v15 = vsel %vm273_vm0, %v1892_v36, 0.0 }
0x14f9   :  { %1895 = vadd.xlane.f32.xlu1 %v1894_v15 }
0x14fb   :  { %v1889_v38 = vpop.f32.mrf.mxu1 }
0x14fc   :  { %v1890_v21 = vadd.f32 %v2964_v45, %v1889_v38 }
0x14fe   :  { %v1893_v2 = vadd.f32 %v1890_v21, %v1853_v42 }
0x1500   :  { %v1897_v58 = vsel %vm273_vm0, %v1893_v2, 0.0 }
0x1501   :  { %1898 = vadd.xlane.f32.xlu0 %v1897_v58 }
0x156c   :  { %v1896_v53 = vpop.xlane.xlu1 %1895 }
0x156d   :  { %v1900_v26 = vmul.f32 %v1896_v53, %v2789_v32 }
0x156f   :  { %v1902_v28 = vsub.f32 %v1892_v36, %v1900_v26 }
0x1571   :  { %v1904_v31 = vmul.f32 %v1902_v28, %v1902_v28 }
0x1573   :  { %v1906_v1 = vsel %vm273_vm0, %v1904_v31, 0.0 }
0x1574   :  { %v1899_v5 = vpop.xlane.xlu0 %1898  ;;  %1907 = vadd.xlane.f32.xlu1 %v1906_v1 }
0x1575   :  { %v1901_v59 = vmul.f32 %v1899_v5, %v2789_v32 }
0x1577   :  { %v1903_v56 = vsub.f32 %v1893_v2, %v1901_v59 }
0x1579   :  { %v1905_v6 = vmul.f32 %v1903_v56, %v1903_v56 }
0x157b   :  { %v1909_v35 = vsel %vm273_vm0, %v1905_v6, 0.0 }
0x157c   :  { %1910 = vadd.xlane.f32.xlu0 %v1909_v35 }
0x15e7   :  { %v1908_v45 = vpop.xlane.xlu1 %1907 }
0x15e8   :  { %v1912_v7 = vmul.f32 %v1908_v45, %v2789_v32 }
0x15ea   :  { %v1914_v8 = vadd.f32 1e-05, %v1912_v7 }
0x15ec   :  { %2229 = vrsqrt.f32 %v1914_v8  ;;  %vm1922_vm10 = vweird.f32 %v1914_v8 }
0x15ef   :  { %v1911_v48 = vpop.xlane.xlu0 %1910 }
0x15f0   :  { %v1913_v43 = vmul.f32 %v1911_v48, %v2789_v32 }
0x15f2   :  { %v2230_v12 = vpop.eup %2229  ;;  %v1915_v14 = vadd.f32 1e-05, %v1913_v43 }
0x15f3   :  { %v1917_v16 = vmul.f32 %v2230_v12, %v1914_v8  ;;  %vm1923_vm5 = vweird.f32 %v2230_v12 }
0x15f4   :  { %2231 = vrsqrt.f32 %v1915_v14  ;;  %vm1924_vm11 = vmor %vm1922_vm10, %vm1923_vm5  ;;  %vm1932_vm3 = vweird.f32 %v1915_v14 }
0x15f5   :  { %v1918_v13 = vmul.f32 %v2230_v12, %v1917_v16 }
0x15f7   :  { %v1919_v60 = vmul.f32 0.5, %v1918_v13 }
0x15f9   :  { %v1920_v57 = vsub.f32 1.5, %v1919_v60 }
0x15fa   :  { %v2232_v11 = vpop.eup %2231 }
0x15fb   :  { %v1921_v55 = vmul.f32 %v2230_v12, %v1920_v57  ;;  %v1927_v19 = vmul.f32 %v2232_v11, %v1915_v14  ;;  %vm1933_vm2 = vweird.f32 %v2232_v11 }
0x15fc   :  { %vm1934_vm12 = vmor %vm1932_vm3, %vm1933_vm2 }
0x15fd   :  { %v1925_v3 = vsel %vm1924_vm11, %v2230_v12, %v1921_v55  ;;  %v1928_v22 = vmul.f32 %v2232_v11, %v1927_v19 }
0x15fe   :  { %v1936_v23 = vmul.f32 %v1925_v3, %v1902_v28 }
0x15ff   :  { %v1929_v24 = vmul.f32 0.5, %v1928_v22 }
0x1600   :  { %v1938_v39 = vmul.f32 %v1936_v23, %v2977_v51 }
0x1601   :  { %v1930_v32 = vsub.f32 1.5, %v1929_v24 }
0x1602   :  { %v1940_v27 = vadd.f32 %v1938_v39, %v2980_v63 }
0x1603   :  { %v1931_v37 = vmul.f32 %v2232_v11, %v1930_v32 }
0x1604   :  { %1942 = vst.msk [vmem:[#allocation19] sm:$0xff] %vm273_vm0, %v1940_v27 }
0x1605   :  { %v1935_v50 = vsel %vm1934_vm12, %v2232_v11, %v1931_v37 }
0x1606   :  { %v1937_v18 = vmul.f32 %v1935_v50, %v1903_v56 }
0x1608   :  { %v1939_v29 = vmul.f32 %v1937_v18, %v2977_v51 }
0x160a   :  { %v1941_v30 = vadd.f32 %v1939_v29, %v2980_v63 }
0x160c   :  { %1943 = vst.msk [vmem:[#allocation19 + $0x8] sm:$0xff] %vm273_vm0, %v1941_v30 }
0x160d   :  { %1956 = dma.vmem_to_hbm [thread:$0]  %s1949_s15, 256, %s1951_s4, [#allocation4], %s2530_s29, %s2530_s29, %s2531_s30  }
0x160e   :  { %2512 = dma.done.wait [#allocation4], 256  }
0x160f   :  { %2513 = vsyncadd [#allocation4], 4294967040 }
0x1610   :  { %1961 = vsyncpa [#allocation3], 1 }
0x1611   :  { %1962 = vsyncpa [#allocation6], 1 }
0x1612   :  { %1963 = vsyncpa [#allocation9], 1 }
0x1613   :  { %1964 = vsyncpa [#allocation12], 1 }
0x1614   :  { %1965 = vsyncpa [#allocation15], 1 }
0x1615   :  { %1966 = vsyncpa [#allocation18], 1 }
0x1616   :  { %1967 = vsyncpa [#allocation4], 1 }

</bundles_post_ra>
